<compile_context>
chip_gen: v7x
topology: tpu7x:2x2x1
jax: 0.10.0
libtpu: 0.0.40
codegen_flags: <defaults>
</compile_context>

<pallas_src>
import functools
import math

import jax
import jax.numpy as jnp
from jax.experimental import pallas as pl
from jax.experimental.pallas import tpu as pltpu


def _dlstm_seq_kernel(band_ref, x_ref, h0_ref, c0_ref, wih_ref, whh_ref, b_ref,
                      out_ref, hout_ref, cout_ref, h_state, c_state):
    """Processes one tick (grid step t) of the dilated LSTM sequence.

    band_ref : SMEM (T,) int32      -> (tick0 + t) % r
    x_ref    : VMEM (B, In)          current-step input
    h0_ref   : VMEM (B, H)           initial hidden state (H = hidden_size * r)
    c0_ref   : VMEM (B, H)           initial cell state
    wih_ref  : VMEM (In, 4H)         transposed torch weight_ih (resident)
    whh_ref  : VMEM (H, 4H)          transposed torch weight_hh (resident)
    b_ref    : VMEM (1, 4H)          b_ih + b_hh
    out_ref  : VMEM (B, hs)          h'[:, left:left+hs] for this step
    hout_ref : VMEM (B, H)           final hidden state (written at last step)
    cout_ref : VMEM (B, H)           final cell state   (written at last step)
    h_state  : VMEM scratch (B, H) f32   carried across grid steps
    c_state  : VMEM scratch (B, H) f32   carried across grid steps
    """
    t = pl.program_id(0)
    B, H = h_state.shape
    hs = out_ref.shape[-1]                      # hidden_size (band width)

    @pl.when(t == 0)
    def _init():
        h_state[...] = h0_ref[...].astype(jnp.float32)
        c_state[...] = c0_ref[...].astype(jnp.float32)

    band = band_ref[t]
    left = pl.multiple_of(band * hs, hs)        # lane/sublane tile aligned

    # Recurrent contraction only over the active band (K = hs instead of H).
    h_band = h_state[:, pl.ds(left, hs)]                         # (B, hs)
    whh_band = whh_ref[pl.ds(left, hs), :]                       # (hs, 4H)

    gates = (jnp.dot(x_ref[...], wih_ref[...],
                     preferred_element_type=jnp.float32)
             + jnp.dot(h_band, whh_band,
                       preferred_element_type=jnp.float32)
             + b_ref[...])                                       # (B, 4H)

    i_g = jax.nn.sigmoid(gates[:, 0 * H:1 * H])
    f_g = jax.nn.sigmoid(gates[:, 1 * H:2 * H])
    g_g = jnp.tanh(gates[:, 2 * H:3 * H])
    o_g = jax.nn.sigmoid(gates[:, 3 * H:4 * H])

    # c_m = c * mask is zero outside the band, so only f*c needs masking;
    # c' and h' are full-width updates.
    col = jax.lax.broadcasted_iota(jnp.int32, (B, H), 1)
    in_band = jnp.logical_and(col >= left, col < left + hs)
    c_m = jnp.where(in_band, c_state[...], jnp.float32(0.0))

    c_new = f_g * c_m + i_g * g_g
    h_new = o_g * jnp.tanh(c_new)

    c_state[...] = c_new
    h_state[...] = h_new

    # Band output for this step (ref dynamic slice on the lane axis, aligned).
    out_ref[...] = h_state[:, pl.ds(left, hs)].astype(out_ref.dtype)

    @pl.when(t == pl.num_programs(0) - 1)
    def _finalize():
        hout_ref[...] = h_state[...].astype(hout_ref.dtype)
        cout_ref[...] = c_state[...].astype(cout_ref.dtype)


@functools.partial(jax.jit, static_argnames=("hidden_size",))
def dlstm_sequence(xs, h0, c0, w_ih_t, w_hh_t, bias, band_idx, *, hidden_size):
    """Run T dilated-LSTM ticks in a single pallas_call.

    xs       : (T, B, In)
    h0, c0   : (B, H)  with H = hidden_size * r
    w_ih_t   : (In, 4H)   (torch weight_ih transposed)
    w_hh_t   : (H, 4H)    (torch weight_hh transposed)
    bias     : (4H,)      (b_ih + b_hh)
    band_idx : (T,) int32 (tick schedule: (tick0 + t) % r)
    returns  : outs (T, B, hidden_size), h' (B, H), c' (B, H)
    """
    T, B, In = xs.shape
    H = h0.shape[1]
    dtype = xs.dtype

    # Pad batch to a multiple of 8 (f32 sublane) for full vreg/MXU rows.
    Bp = max(8, ((B + 7) // 8) * 8)
    if Bp != B:
        xs = jnp.pad(xs, ((0, 0), (0, Bp - B), (0, 0)))
        h0 = jnp.pad(h0, ((0, Bp - B), (0, 0)))
        c0 = jnp.pad(c0, ((0, Bp - B), (0, 0)))

    bias2d = bias.reshape(1, -1).astype(jnp.float32)

    grid_spec = pltpu.PrefetchScalarGridSpec(
        num_scalar_prefetch=1,
        grid=(T,),
        in_specs=[
            # per-step input block
            pl.BlockSpec((None, Bp, In), lambda t, band: (t, 0, 0)),
            # initial state (resident; read only at t == 0)
            pl.BlockSpec((Bp, H), lambda t, band: (0, 0)),
            pl.BlockSpec((Bp, H), lambda t, band: (0, 0)),
            # weights / bias: constant index -> DMA'd once, stay in VMEM
            pl.BlockSpec((In, 4 * H), lambda t, band: (0, 0)),
            pl.BlockSpec((H, 4 * H), lambda t, band: (0, 0)),
            pl.BlockSpec((1, 4 * H), lambda t, band: (0, 0)),
        ],
        out_specs=(
            pl.BlockSpec((None, Bp, hidden_size), lambda t, band: (t, 0, 0)),
            pl.BlockSpec((Bp, H), lambda t, band: (0, 0)),
            pl.BlockSpec((Bp, H), lambda t, band: (0, 0)),
        ),
        scratch_shapes=[
            pltpu.VMEM((Bp, H), jnp.float32),   # h carry
            pltpu.VMEM((Bp, H), jnp.float32),   # c carry
        ],
    )

    outs, h_new, c_new = pl.pallas_call(
        _dlstm_seq_kernel,
        out_shape=(
            jax.ShapeDtypeStruct((T, Bp, hidden_size), dtype),
            jax.ShapeDtypeStruct((Bp, H), dtype),
            jax.ShapeDtypeStruct((Bp, H), dtype),
        ),
        grid_spec=grid_spec,
        compiler_params=pltpu.CompilerParams(
            dimension_semantics=("arbitrary",)),   # sequential: state carried
    )(band_idx, xs, h0, c0, w_ih_t, w_hh_t, bias2d)

    return outs[:, :B], h_new[:B], c_new[:B]


class DLSTM:
    """JAX/Pallas mirror of the PyTorch dLSTM module."""

    def __init__(self, input_size, hidden_size, r, key):
        self.r = r
        self.hidden_size = hidden_size
        H = hidden_size * r
        self.H = H
        k = 1.0 / math.sqrt(float(H))
        k0, k1, k2, k3 = jax.random.split(key, 4)
        # Same parameter shapes / init distribution as torch.nn.LSTMCell.
        self.w_ih = jax.random.uniform(k0, (4 * H, input_size),
                                       minval=-k, maxval=k, dtype=jnp.float32)
        self.w_hh = jax.random.uniform(k1, (4 * H, H),
                                       minval=-k, maxval=k, dtype=jnp.float32)
        self.b_ih = jax.random.uniform(k2, (4 * H,),
                                       minval=-k, maxval=k, dtype=jnp.float32)
        self.b_hh = jax.random.uniform(k3, (4 * H,),
                                       minval=-k, maxval=k, dtype=jnp.float32)
        # Pre-transposed for the kernel (x @ W layout).
        self.w_ih_t = jnp.transpose(self.w_ih)
        self.w_hh_t = jnp.transpose(self.w_hh)
        self.bias = self.b_ih + self.b_hh
        self.tick = 0

    def init_state(self, key, batch_size=1):
        self.tick = 0
        k1, k2 = jax.random.split(key)
        return (jax.random.uniform(k1, (batch_size, self.H), dtype=jnp.float32),
                jax.random.uniform(k2, (batch_size, self.H), dtype=jnp.float32))

    def forward_sequence(self, xs, states_M):
        """Process a whole (T, B, In) sequence in one kernel launch."""
        T = xs.shape[0]
        band_idx = jnp.asarray(
            [(self.tick + t) % self.r for t in range(T)], dtype=jnp.int32)
        outs, h_new, c_new = dlstm_sequence(
            xs, states_M[0], states_M[1],
            self.w_ih_t, self.w_hh_t, self.bias, band_idx,
            hidden_size=self.hidden_size)
        self.tick += T
        return outs, (h_new, c_new)

    def forward(self, x, states_M, batch_size=1):
        """Single-tick API matching the PyTorch module."""
        outs, states = self.forward_sequence(x[None], states_M)
        return outs[0], states


def _reference_step(x, h, c, w_ih, w_hh, b_ih, b_hh, left, hidden_size):
    """Pure-JAX reference of the PyTorch forward (for verification)."""
    H = h.shape[1]
    col = jnp.arange(H)[None, :]
    mask = ((col >= left) & (col < left + hidden_size)).astype(h.dtype)
    h_m, c_m = h * mask, c * mask
    gates = (jnp.dot(x, w_ih.T, precision=jax.lax.Precision.HIGHEST)
             + jnp.dot(h_m, w_hh.T, precision=jax.lax.Precision.HIGHEST)
             + b_ih + b_hh)
    i_g = jax.nn.sigmoid(gates[:, 0 * H:1 * H])
    f_g = jax.nn.sigmoid(gates[:, 1 * H:2 * H])
    g_g = jnp.tanh(gates[:, 2 * H:3 * H])
    o_g = jax.nn.sigmoid(gates[:, 3 * H:4 * H])
    c_new = f_g * c_m + i_g * g_g
    h_new = o_g * jnp.tanh(c_new)
    return h_new[:, left:left + hidden_size], (h_new, c_new)


if __name__ == "__main__":
    key = jax.random.PRNGKey(0)
    k_param, k_state, k_x = jax.random.split(key, 3)

    batch_size = 4
    input_size = 32
    hidden_size = 128
    r = 3
    T = 7                                    # exercises every band + wrap-around

    model = DLSTM(input_size, hidden_size, r, k_param)
    h0, c0 = model.init_state(k_state, batch_size=batch_size)
    xs = jax.random.normal(k_x, (T, batch_size, input_size), dtype=jnp.float32)

    # One kernel launch for the whole sequence.
    outs, (h_new, c_new) = model.forward_sequence(xs, (h0, c0))
    outs = jax.block_until_ready(outs)
    h_new = jax.block_until_ready(h_new)
    c_new = jax.block_until_ready(c_new)

    # Per-step pure-JAX reference (exact PyTorch semantics).
    h_ref, c_ref = h0, c0
    ok = True
    for t in range(T):
        left = (t % r) * hidden_size
        ref_out, (h_ref, c_ref) = _reference_step(
            xs[t], h_ref, c_ref, model.w_ih, model.w_hh,
            model.b_ih, model.b_hh, left, hidden_size)
        ok &= bool(jnp.allclose(outs[t], ref_out, atol=1e-4, rtol=1e-4))
    ok &= bool(jnp.allclose(h_new, h_ref, atol=1e-4, rtol=1e-4))
    ok &= bool(jnp.allclose(c_new, c_ref, atol=1e-4, rtol=1e-4))

    if ok:
        print("KERNEL_OK")
    else:
        raise SystemExit("mismatch vs reference")
</pallas_src>

<mosaic_0001>
module attributes {stable_mosaic.version = 11 : i64} {
  func.func @_dlstm_seq_kernel(%arg0: i32, %arg1: memref<7xi32, #tpu.memory_space<smem>>, %arg2: memref<1x8x32xf32, #tpu.memory_space<vmem>>, %arg3: memref<8x384xf32, #tpu.memory_space<vmem>>, %arg4: memref<8x384xf32, #tpu.memory_space<vmem>>, %arg5: memref<32x1536xf32, #tpu.memory_space<vmem>>, %arg6: memref<384x1536xf32, #tpu.memory_space<vmem>>, %arg7: memref<1x1536xf32, #tpu.memory_space<vmem>>, %arg8: memref<1x8x128xf32, #tpu.memory_space<vmem>>, %arg9: memref<8x384xf32, #tpu.memory_space<vmem>>, %arg10: memref<8x384xf32, #tpu.memory_space<vmem>>, %arg11: memref<8x384xf32, #tpu.memory_space<vmem>>, %arg12: memref<8x384xf32, #tpu.memory_space<vmem>>) attributes {dimension_semantics = [#tpu.dimension_semantics<arbitrary>], iteration_bounds = array<i64: 7>, scalar_prefetch = 1 : i64, scratch_operands = 2 : i64, tpu.core_type = #tpu.core_type<tc>, window_params = [{transform_indices = @transform_0, window_bounds = array<i64: 1, 8, 32>}, {pipeline_mode = #tpu.pipeline_mode<synchronous>, transform_indices = @transform_1, window_bounds = array<i64: 8, 384>}, {pipeline_mode = #tpu.pipeline_mode<synchronous>, transform_indices = @transform_2, window_bounds = array<i64: 8, 384>}, {pipeline_mode = #tpu.pipeline_mode<synchronous>, transform_indices = @transform_3, window_bounds = array<i64: 32, 1536>}, {pipeline_mode = #tpu.pipeline_mode<synchronous>, transform_indices = @transform_4, window_bounds = array<i64: 384, 1536>}, {pipeline_mode = #tpu.pipeline_mode<synchronous>, transform_indices = @transform_5, window_bounds = array<i64: 1, 1536>}, {transform_indices = @transform_6, window_bounds = array<i64: 1, 8, 128>}, {pipeline_mode = #tpu.pipeline_mode<synchronous>, transform_indices = @transform_7, window_bounds = array<i64: 8, 384>}, {pipeline_mode = #tpu.pipeline_mode<synchronous>, transform_indices = @transform_8, window_bounds = array<i64: 8, 384>}]} {
    %c0_i32 = arith.constant 0 : i32
    %0 = arith.cmpi eq, %arg0, %c0_i32 : i32
    %1 = arith.extui %0 : i1 to i32
    %c0_i32_0 = arith.constant 0 : i32
    %2 = arith.cmpi ne, %1, %c0_i32_0 : i32
    scf.if %2 {
      %c0_26 = arith.constant 0 : index
      %c0_27 = arith.constant 0 : index
      %65 = vector.load %arg3[%c0_26, %c0_27] : memref<8x384xf32, #tpu.memory_space<vmem>>, vector<8x384xf32>
      %c0_28 = arith.constant 0 : index
      %c0_29 = arith.constant 0 : index
      %66 = vector.load %arg11[%c0_28, %c0_29] : memref<8x384xf32, #tpu.memory_space<vmem>>, vector<8x384xf32>
      tpu.vector_store %arg11[%c0_28, %c0_29], %65 {strides = array<i32>} : memref<8x384xf32, #tpu.memory_space<vmem>>, vector<8x384xf32>,
      %c0_30 = arith.constant 0 : index
      %c0_31 = arith.constant 0 : index
      %67 = vector.load %arg4[%c0_30, %c0_31] : memref<8x384xf32, #tpu.memory_space<vmem>>, vector<8x384xf32>
      %c0_32 = arith.constant 0 : index
      %c0_33 = arith.constant 0 : index
      %68 = vector.load %arg12[%c0_32, %c0_33] : memref<8x384xf32, #tpu.memory_space<vmem>>, vector<8x384xf32>
      tpu.vector_store %arg12[%c0_32, %c0_33], %67 {strides = array<i32>} : memref<8x384xf32, #tpu.memory_space<vmem>>, vector<8x384xf32>,
    } else {
    }
    %3 = arith.index_cast %arg0 : i32 to index
    %4 = memref.load %arg1[%3] : memref<7xi32, #tpu.memory_space<smem>>
    %c128_i32 = arith.constant 128 : i32
    %5 = arith.muli %4, %c128_i32 : i32
    %6 = tpu.assume_multiple %5, 128 : i32
    %c0 = arith.constant 0 : index
    %7 = arith.index_cast %6 : i32 to index
    %8 = vector.load %arg11[%c0, %7] : memref<8x384xf32, #tpu.memory_space<vmem>>, vector<8x128xf32>
    %9 = arith.index_cast %6 : i32 to index
    %c0_1 = arith.constant 0 : index
    %10 = vector.load %arg6[%9, %c0_1] : memref<384x1536xf32, #tpu.memory_space<vmem>>, vector<128x1536xf32>
    %c0_2 = arith.constant 0 : index
    %c0_3 = arith.constant 0 : index
    %c0_4 = arith.constant 0 : index
    %11 = vector.load %arg2[%c0_2, %c0_3, %c0_4] : memref<1x8x32xf32, #tpu.memory_space<vmem>>, vector<1x8x32xf32>
    %12 = vector.shape_cast %11 : vector<1x8x32xf32> to vector<8x32xf32>
    %c0_5 = arith.constant 0 : index
    %c0_6 = arith.constant 0 : index
    %13 = vector.load %arg5[%c0_5, %c0_6] : memref<32x1536xf32, #tpu.memory_space<vmem>>, vector<32x1536xf32>
    %cst = arith.constant dense<0.000000e+00> : vector<8x1536xf32>
    %14 = tpu.matmul %12, %13, %cst {dimension_numbers = #tpu.dot_dimension_numbers<[1], [0], [0], [1], [0, 0, 1, 1], [], []>} : vector<8x32xf32>, vector<32x1536xf32>, vector<8x1536xf32> -> vector<8x1536xf32>
    %cst_7 = arith.constant dense<0.000000e+00> : vector<8x1536xf32>
    %15 = tpu.matmul %8, %10, %cst_7 {dimension_numbers = #tpu.dot_dimension_numbers<[1], [0], [0], [1], [0, 0, 1, 1], [], []>} : vector<8x128xf32>, vector<128x1536xf32>, vector<8x1536xf32> -> vector<8x1536xf32>
    %16 = arith.addf %14, %15 : vector<8x1536xf32>
    %c0_8 = arith.constant 0 : index
    %c0_9 = arith.constant 0 : index
    %17 = vector.load %arg7[%c0_8, %c0_9] : memref<1x1536xf32, #tpu.memory_space<vmem>>, vector<1x1536xf32>
    %18 = vector.broadcast %17 : vector<1x1536xf32> to vector<8x1536xf32>
    %19 = arith.addf %16, %18 : vector<8x1536xf32>
    %20 = vector.extract_strided_slice %19 {offsets = [0, 0], sizes = [8, 384], strides = [1, 1]} : vector<8x1536xf32> to vector<8x384xf32>
    %21 = arith.negf %20 : vector<8x384xf32>
    %22 = math.exp %21 : vector<8x384xf32>
    %cst_10 = arith.constant 1.000000e+00 : f32
    %23 = vector.broadcast %cst_10 : f32 to vector<8x384xf32>
    %24 = arith.addf %23, %22 : vector<8x384xf32>
    %25 = arith.divf %23, %24 : vector<8x384xf32>
    %26 = vector.extract_strided_slice %19 {offsets = [0, 384], sizes = [8, 384], strides = [1, 1]} : vector<8x1536xf32> to vector<8x384xf32>
    %27 = arith.negf %26 : vector<8x384xf32>
    %28 = math.exp %27 : vector<8x384xf32>
    %cst_11 = arith.constant 1.000000e+00 : f32
    %29 = vector.broadcast %cst_11 : f32 to vector<8x384xf32>
    %30 = arith.addf %29, %28 : vector<8x384xf32>
    %31 = arith.divf %29, %30 : vector<8x384xf32>
    %32 = vector.extract_strided_slice %19 {offsets = [0, 768], sizes = [8, 384], strides = [1, 1]} : vector<8x1536xf32> to vector<8x384xf32>
    %33 = math.tanh %32 : vector<8x384xf32>
    %34 = vector.extract_strided_slice %19 {offsets = [0, 1152], sizes = [8, 384], strides = [1, 1]} : vector<8x1536xf32> to vector<8x384xf32>
    %35 = arith.negf %34 : vector<8x384xf32>
    %36 = math.exp %35 : vector<8x384xf32>
    %cst_12 = arith.constant 1.000000e+00 : f32
    %37 = vector.broadcast %cst_12 : f32 to vector<8x384xf32>
    %38 = arith.addf %37, %36 : vector<8x384xf32>
    %39 = arith.divf %37, %38 : vector<8x384xf32>
    %40 = tpu.iota {dimensions = array<i32: 1>} : vector<8x384xi32>
    %41 = vector.broadcast %6 : i32 to vector<8x384xi32>
    %42 = arith.cmpi sge, %40, %41 : vector<8x384xi32>
    %c128_i32_13 = arith.constant 128 : i32
    %43 = arith.addi %6, %c128_i32_13 : i32
    %44 = vector.broadcast %43 : i32 to vector<8x384xi32>
    %45 = arith.cmpi slt, %40, %44 : vector<8x384xi32>
    %46 = arith.andi %42, %45 : vector<8x384xi1>
    %c0_14 = arith.constant 0 : index
    %c0_15 = arith.constant 0 : index
    %47 = vector.load %arg12[%c0_14, %c0_15] : memref<8x384xf32, #tpu.memory_space<vmem>>, vector<8x384xf32>
    %cst_16 = arith.constant 0.000000e+00 : f32
    %48 = vector.broadcast %cst_16 : f32 to vector<8x384xf32>
    %49 = arith.select %46, %47, %48 : vector<8x384xi1>, vector<8x384xf32>
    %50 = arith.mulf %31, %49 : vector<8x384xf32>
    %51 = arith.mulf %25, %33 : vector<8x384xf32>
    %52 = arith.addf %50, %51 : vector<8x384xf32>
    %53 = math.tanh %52 : vector<8x384xf32>
    %54 = arith.mulf %39, %53 : vector<8x384xf32>
    %c0_17 = arith.constant 0 : index
    %c0_18 = arith.constant 0 : index
    %55 = vector.load %arg12[%c0_17, %c0_18] : memref<8x384xf32, #tpu.memory_space<vmem>>, vector<8x384xf32>
    tpu.vector_store %arg12[%c0_17, %c0_18], %52 {strides = array<i32>} : memref<8x384xf32, #tpu.memory_space<vmem>>, vector<8x384xf32>,
    %c0_19 = arith.constant 0 : index
    %c0_20 = arith.constant 0 : index
    %56 = vector.load %arg11[%c0_19, %c0_20] : memref<8x384xf32, #tpu.memory_space<vmem>>, vector<8x384xf32>
    tpu.vector_store %arg11[%c0_19, %c0_20], %54 {strides = array<i32>} : memref<8x384xf32, #tpu.memory_space<vmem>>, vector<8x384xf32>,
    %c0_21 = arith.constant 0 : index
    %57 = arith.index_cast %6 : i32 to index
    %58 = vector.load %arg11[%c0_21, %57] : memref<8x384xf32, #tpu.memory_space<vmem>>, vector<8x128xf32>
    %c0_22 = arith.constant 0 : index
    %c0_23 = arith.constant 0 : index
    %c0_24 = arith.constant 0 : index
    %59 = vector.load %arg8[%c0_22, %c0_23, %c0_24] : memref<1x8x128xf32, #tpu.memory_space<vmem>>, vector<1x8x128xf32>
    %60 = vector.shape_cast %59 : vector<1x8x128xf32> to vector<8x128xf32>
    %61 = vector.shape_cast %58 : vector<8x128xf32> to vector<1x8x128xf32>
    tpu.vector_store %arg8[%c0_22, %c0_23, %c0_24], %61 {strides = array<i32>} : memref<1x8x128xf32, #tpu.memory_space<vmem>>, vector<1x8x128xf32>,
    %c6_i32 = arith.constant 6 : i32
    %62 = arith.cmpi eq, %arg0, %c6_i32 : i32
    %63 = arith.extui %62 : i1 to i32
    %c0_i32_25 = arith.constant 0 : i32
    %64 = arith.cmpi ne, %63, %c0_i32_25 : i32
    scf.if %64 {
      %c0_26 = arith.constant 0 : index
      %c0_27 = arith.constant 0 : index
      %65 = vector.load %arg11[%c0_26, %c0_27] : memref<8x384xf32, #tpu.memory_space<vmem>>, vector<8x384xf32>
      %c0_28 = arith.constant 0 : index
      %c0_29 = arith.constant 0 : index
      %66 = vector.load %arg9[%c0_28, %c0_29] : memref<8x384xf32, #tpu.memory_space<vmem>>, vector<8x384xf32>
      tpu.vector_store %arg9[%c0_28, %c0_29], %65 {strides = array<i32>} : memref<8x384xf32, #tpu.memory_space<vmem>>, vector<8x384xf32>,
      %c0_30 = arith.constant 0 : index
      %c0_31 = arith.constant 0 : index
      %67 = vector.load %arg12[%c0_30, %c0_31] : memref<8x384xf32, #tpu.memory_space<vmem>>, vector<8x384xf32>
      %c0_32 = arith.constant 0 : index
      %c0_33 = arith.constant 0 : index
      %68 = vector.load %arg10[%c0_32, %c0_33] : memref<8x384xf32, #tpu.memory_space<vmem>>, vector<8x384xf32>
      tpu.vector_store %arg10[%c0_32, %c0_33], %67 {strides = array<i32>} : memref<8x384xf32, #tpu.memory_space<vmem>>, vector<8x384xf32>,
    } else {
    }
    return
  }
  func.func @transform_0(%arg0: i32, %arg1: memref<7xi32, #tpu.memory_space<smem>>) -> (i32, i32, i32) {
    %c0_i32 = arith.constant 0 : i32
    %c0_i32_0 = arith.constant 0 : i32
    %c0_i32_1 = arith.constant 0 : i32
    return %arg0, %c0_i32, %c0_i32_0 : i32, i32, i32
  }
  func.func @transform_1(%arg0: i32, %arg1: memref<7xi32, #tpu.memory_space<smem>>) -> (i32, i32) {
    %c0_i32 = arith.constant 0 : i32
    %c0_i32_0 = arith.constant 0 : i32
    %c0_i32_1 = arith.constant 0 : i32
    return %c0_i32, %c0_i32_0 : i32, i32
  }
  func.func @transform_2(%arg0: i32, %arg1: memref<7xi32, #tpu.memory_space<smem>>) -> (i32, i32) {
    %c0_i32 = arith.constant 0 : i32
    %c0_i32_0 = arith.constant 0 : i32
    %c0_i32_1 = arith.constant 0 : i32
    return %c0_i32, %c0_i32_0 : i32, i32
  }
  func.func @transform_3(%arg0: i32, %arg1: memref<7xi32, #tpu.memory_space<smem>>) -> (i32, i32) {
    %c0_i32 = arith.constant 0 : i32
    %c0_i32_0 = arith.constant 0 : i32
    %c0_i32_1 = arith.constant 0 : i32
    return %c0_i32, %c0_i32_0 : i32, i32
  }
  func.func @transform_4(%arg0: i32, %arg1: memref<7xi32, #tpu.memory_space<smem>>) -> (i32, i32) {
    %c0_i32 = arith.constant 0 : i32
    %c0_i32_0 = arith.constant 0 : i32
    %c0_i32_1 = arith.constant 0 : i32
    return %c0_i32, %c0_i32_0 : i32, i32
  }
  func.func @transform_5(%arg0: i32, %arg1: memref<7xi32, #tpu.memory_space<smem>>) -> (i32, i32) {
    %c0_i32 = arith.constant 0 : i32
    %c0_i32_0 = arith.constant 0 : i32
    %c0_i32_1 = arith.constant 0 : i32
    return %c0_i32, %c0_i32_0 : i32, i32
  }
  func.func @transform_6(%arg0: i32, %arg1: memref<7xi32, #tpu.memory_space<smem>>) -> (i32, i32, i32) {
    %c0_i32 = arith.constant 0 : i32
    %c0_i32_0 = arith.constant 0 : i32
    %c0_i32_1 = arith.constant 0 : i32
    return %arg0, %c0_i32, %c0_i32_0 : i32, i32, i32
  }
  func.func @transform_7(%arg0: i32, %arg1: memref<7xi32, #tpu.memory_space<smem>>) -> (i32, i32) {
    %c0_i32 = arith.constant 0 : i32
    %c0_i32_0 = arith.constant 0 : i32
    %c0_i32_1 = arith.constant 0 : i32
    return %c0_i32, %c0_i32_0 : i32, i32
  }
  func.func @transform_8(%arg0: i32, %arg1: memref<7xi32, #tpu.memory_space<smem>>) -> (i32, i32) {
    %c0_i32 = arith.constant 0 : i32
    %c0_i32_0 = arith.constant 0 : i32
    %c0_i32_1 = arith.constant 0 : i32
    return %c0_i32, %c0_i32_0 : i32, i32
  }
}

</mosaic_0001>

<bundles_post_ra>
// kernel: dlstm_sequence.1
= control target key start
LH: loop header
LB: loop body
LE: loop exit
PB: predicated region body
PF: predicated region fallthrough
CT: control target
= control target key end

     0   :  { %s2657_s0 = inlined_call_operand.hbm [shape: s32[7], index: 0, kind: input, shape index: {}]   ;;  %s2658_s1 = inlined_call_operand.vmem [shape: f32[7,8,32], index: 1, kind: input, shape index: {}]   ;;  %s2659_s2 = inlined_call_operand.vmem [shape: f32[8,384], index: 2, kind: input, shape index: {}]   ;;  %s2660_s3 = inlined_call_operand.vmem [shape: f32[8,384], index: 3, kind: input, shape index: {}]   ;;  %s2661_s4 = inlined_call_operand.hbm [shape: f32[32,1536], index: 4, kind: input, shape index: {}]   ;;  %s2662_s5 = inlined_call_operand.hbm [shape: f32[384,1536], index: 5, kind: input, shape index: {}]   ;;  %s2663_s6 = inlined_call_operand.vmem [shape: f32[1,1536], index: 6, kind: input, shape index: {}]   ;;  %s2664_s7 = inlined_call_operand.vmem [shape: f32[7,8,128], index: 7, kind: output, shape index: {0}]   ;;  %s2665_s8 = inlined_call_operand.vmem [shape: f32[8,384], index: 8, kind: output, shape index: {1}]   ;;  %s2666_s9 = inlined_call_operand.vmem [shape: f32[8,384], index: 9, kind: output, shape index: {2}]  }
   0x1   :  { %s2108_s11 = scalar_lea.hbm %s2657_s0, 16 }
   0x2   :  { %p2109_p0 = scmp.ne.s32.totalorder %s2657_s0, %s2108_s11  ;;  %p2112_p1 = scmp.lt.u32.totalorder %s2108_s11, %s2657_s0 }
   0x4   :  { %p2114_p2 = pnand %p2112_p1, %p2109_p0 }
   0x6   :  { %2117 = shalt.err (!%p2114_p2)  }
   0x7   :  { %s2192_s16 = smov [#allocation5]  }
   0x8   :  { %16 = dma.hbm_to_smem %s2657_s0, 16, %s2192_s16, [#allocation4] }
   0x9   :  { %2178 = dma.done.wait [#allocation4], 16 }
   0xa   :  { %2179 = vsyncadd [#allocation4], 4294967280 }
   0xb   :  { %18 = sfence }
   0xc   :  { %19 = vsyncpa [#allocation7], 0 }
   0xd   :  { %20 = vsyncpa [#allocation9], 0  ;;  %s2260_s19 = smov 0  }
   0xe LB: > { %s2266_s20 = sadd.s32 4294967295, %s2190_s19   ;;  %p1743_p3 = scmp.ge.s32.totalorder %s2190_s19, 1  ;;  %s2190_s19 = sphi %s2260_s19, %s26_s19  }
   0xf   : > { %p230_p4 = scmp.lt.s32.totalorder %s2190_s19, 8  ;;  %s2193_s0 = smov [#allocation6]  }
  0x10   : > { %s248_s21 = sshll.u32 %s2193_s0, 4  ;;  %p2667_p7 = scmp.eq.s32.totalorder %s2266_s20, 0  ;;  %s249_s21 = int_to_ptr.vmem [resolvable:$true] %s248_s21 }
  0x11   : > { %p2271_p6 = pnand %p1743_p3, %p230_p4  ;;  %s2194_s23 = smov [#allocation8]  }
  0x12   : > { %s261_s24 = sshll.u32 %s2194_s23, 4  ;;  %s2118_s28 = scalar_lea.hbm %s2661_s4, 6144  ;;  %s2284_s24 = int_to_ptr.vmem [resolvable:$true] %s261_s24 }
  0x13   : > { %s2669_s22 = scalar_select %p2271_p6, 1, 0 }
  0x14   : > { %p2035_p8 = pneg %p2271_p6  ;;  %p2119_p10 = scmp.ne.s32.totalorder %s2661_s4, %s2118_s28 }
  0x15   : > { %p2125_p0 = scmp.lt.u32.totalorder %s2118_s28, %s2661_s4 }
  0x16   : > { %p2280_p9 = pnand %p2667_p7, %p2035_p8 }
  0x18   : > { %p2120_p11 = pneg %p2280_p9 }
  0x1a   : > { %p2121_p12 = pnand %p2120_p11, %p2119_p10 }
  0x1c   : > { %p2122_p13 = pneg %p2121_p12 }
  0x1e   : > { %p2127_p1 = pnand %p2125_p0, %p2122_p13 }
  0x20   : > { %2130 = shalt.err (!%p2127_p1)
}
  0x21   : > { %s2131_s12 = scalar_lea.vmem %s249_s21, 6144  ;;  %p2139_p8 = scmp.lt.s32.totalorder %s249_s21, %s249_s21 }
  0x22   : > { %p2132_p2 = scmp.ne.s32.totalorder %s249_s21, %s2131_s12  ;;  %p2140_p5 = scmp.lt.s32.totalorder %s2131_s12, %s2131_s12 }
  0x24   : > { %p2134_p3 = pnand %p2132_p2, %p2120_p11  ;;  %p2141_p7 = por %p2140_p5, %p2139_p8 }
  0x26   : > { %p2135_p4 = pneg %p2134_p3 }
  0x28   : > { %p2142_p6 = pnand %p2141_p7, %p2135_p4 }
  0x2a   : > { %2145 = shalt.err (!%p2142_p6)
}
  0x2b   : > { %s2195_s13 = smov 1536   ;;  %s2196_s14 = smov 96  }
  0x2c   : > { %2038 = dma.hbm_to_vmem [thread:$0]  (!%p2280_p9), %s2661_s4, 6144, %s249_s21, [#allocation7], %s2195_s13, %s2195_s13, %s2196_s14  }
  0x2d   : > { %s2146_s0 = scalar_lea.hbm %s2662_s5, 73728 }
  0x2e   : > { %p2147_p10 = scmp.ne.s32.totalorder %s2662_s5, %s2146_s0  ;;  %p2153_p7 = scmp.lt.u32.totalorder %s2146_s0, %s2662_s5 }
  0x30   : > { %p2149_p5 = pnand %p2147_p10, %p2120_p11 }
  0x32   : > { %p2150_p6 = pneg %p2149_p5 }
  0x34   : > { %p2155_p12 = pnand %p2153_p7, %p2150_p6 }
  0x36   : > { %2158 = shalt.err (!%p2155_p12)
}
  0x37   : > { %s2159_s21 = scalar_lea.vmem %s2284_s24, 73728  ;;  %p2167_p2 = scmp.lt.s32.totalorder %s2284_s24, %s2284_s24 }
  0x38   : > { %p2160_p13 = scmp.ne.s32.totalorder %s2284_s24, %s2159_s21  ;;  %p2168_p3 = scmp.lt.s32.totalorder %s2159_s21, %s2159_s21 }
  0x3a   : > { %p2162_p0 = pnand %p2160_p13, %p2120_p11  ;;  %p2169_p4 = por %p2168_p3, %p2167_p2 }
  0x3c   : > { %p2163_p1 = pneg %p2162_p0 }
  0x3e   : > { %p2170_p8 = pnand %p2169_p4, %p2163_p1 }
  0x40   : > { %2173 = shalt.err (!%p2170_p8)
}
  0x41   : > { %2041 = dma.hbm_to_vmem [thread:$0]  (!%p2280_p9), %s2662_s5, 73728, %s2284_s24, [#allocation9], %s2195_s13, %s2195_s13, %s2196_s14  }
  0x42   : > { %p2671_p10 = scmp.ne.s32.totalorder %s2669_s22, 0 }
  0x43   : > { %p2672_p5 = scmp.eq.s32.totalorder (!%p2671_p10), %s2266_s20, 0 }
  0x44   : > { %287 = sbr.rel (%p2671_p10) target bundleno = 483 (0x1e3), region = 44 }
  0x4b   : > { %2181 = dma.done.wait (%p2672_p5), [#allocation7], 6144   ;;  %p2673_p11 = pmov %p2672_p5 }
  0x4c   : > { %p2674_p6 = pmov %p2672_p5 }
  0x4d   : > { %2183 = vsyncadd (%p2673_p11), [#allocation7], 4294961152 }
  0x4e   : > { %2185 = dma.done.wait (%p2674_p6), [#allocation9], 73728   ;;  %p2675_p7 = pmov %p2672_p5 }
  0x4f   : > { %p323_p12 = scmp.lt.s32.totalorder %s2266_s20, 6  ;;  %p2676_p9 = scmp.ne.s32.totalorder %s2266_s20, 0 }
  0x50   : > { %2187 = vsyncadd (%p2675_p7), [#allocation9], 4294893568  ;;  %v335_v0 = vld [vmem:[%s2659_s2] sm:$0xff] (!%p2676_p9)  ;;  %v336_v1 = vld [vmem:[%s2659_s2 + $0x8] sm:$0xff] (!%p2676_p9) }
  0x51   : > { %s324_s25 = scalar_select %p323_p12, %s2266_s20, 6 }
  0x52   : > { %334 = sbr.rel (%p2676_p9) target bundleno = 89 (0x59), region = 56  ;;  %v337_v2 = vld [vmem:[%s2659_s2 + $0x10] sm:$0xff] (!%p2676_p9)  ;;  %338 = vst [vmem:[#allocation2] sm:$0xff] (!%p2676_p9), %v335_v0  ;;  %339 = vst [vmem:[#allocation2 + $0x8] sm:$0xff] (!%p2676_p9), %v336_v1  ;;  %v341_v3 = vld [vmem:[%s2660_s3] sm:$0xff] (!%p2676_p9) }
  0x53   : > { %s1750_s24 = sshll.u32 %s324_s25, 3  ;;  %340 = vst [vmem:[#allocation2 + $0x10] sm:$0xff] (!%p2676_p9), %v337_v2  ;;  %v342_v4 = vld [vmem:[%s2660_s3 + $0x8] sm:$0xff] (!%p2676_p9)  ;;  %v343_v5 = vld [vmem:[%s2660_s3 + $0x10] sm:$0xff] (!%p2676_p9)  ;;  %344 = vst [vmem:[#allocation3] sm:$0xff] (!%p2676_p9), %v341_v3 }
  0x54   : > { %s2348_s11 = scalar_lea.vmem %s2658_s1, %s1750_s24  ;;  %s2353_s14 = scalar_lea.vmem %s2664_s7, %s1750_s24  ;;  %345 = vst [vmem:[#allocation3 + $0x8] sm:$0xff] (!%p2676_p9), %v342_v4  ;;  %346 = vst [vmem:[#allocation3 + $0x10] sm:$0xff] (!%p2676_p9), %v343_v5 }
  0x59 PF: > { %s347_s25 = sld [smem:[#allocation5 + %s2266_s20]]  ;;  %v2197_v6 = vmov 0.0   ;;  %vm1026_vm0 = vcmask 261120   ;;  %p1771_p13 = scmp.ne.s32.totalorder %s2266_s20, 6 }
  0x5a   : > { %664 = vmatprep.mubr.f32.mxu0 %v2197_v6  ;;  %735 = vmatprep.mubr.f32.mxu1 %v2197_v6 }
  0x5f   : > { %s2378_s24 = sshll.u32 %s347_s25, 7 }
  0x60   : > { %s354_s10 = sshra.s32 %s2378_s24, 3  ;;  %s349_s13 = sshra.s32 %s2378_s24, 7 }
  0x61   : > { %s1774_s22 = smul.u32 96, %s354_s10  ;;  %s2450_s15 = sshll.u32 %s349_s13, 3 }
  0x62   : > { %s352_s16 = scalar_lea.vmem [#allocation2], %s2450_s15  ;;  %s1597_s23 = sadd.s32 128, %s2378_s24 }
  0x63   : > { %s2381_s12 = scalar_lea.vmem [#allocation8], %s1774_s22 }
  0x64   : > { %v360_v7 = vld [vmem:[%s2381_s12 + $0x8] sm:$0xff]  ;;  %v362_v9 = vld [vmem:[%s2381_s12 + $0x18] sm:$0xff]  ;;  %v359_v12 = vld [vmem:[%s2381_s12] sm:$0xff] }
  0x65   : > { %v372_v8 = vld [vmem:[%s2381_s12 + $0x68] sm:$0xff]  ;;  %v374_v11 = vld [vmem:[%s2381_s12 + $0x78] sm:$0xff]  ;;  %v371_v13 = vld [vmem:[%s2381_s12 + $0x60] sm:$0xff] }
  0x66   : > { %v1775_v10 = vpack.c.bf16 %v372_v8, %v360_v7  ;;  %v1807_v14 = vpack.c.bf16 %v374_v11, %v362_v9  ;;  %v1777_v15 = vpack.c.bf16 %v371_v13, %v359_v12  ;;  %v361_v16 = vld [vmem:[%s2381_s12 + $0x10] sm:$0xff]  ;;  %v384_v18 = vld [vmem:[%s2381_s12 + $0xc8] sm:$0xff]  ;;  %v386_v21 = vld [vmem:[%s2381_s12 + $0xd8] sm:$0xff] }
  0x67   : > { %v373_v17 = vld [vmem:[%s2381_s12 + $0x70] sm:$0xff]  ;;  %v396_v20 = vld [vmem:[%s2381_s12 + $0x128] sm:$0xff]  ;;  %v398_v22 = vld [vmem:[%s2381_s12 + $0x138] sm:$0xff] }
  0x68   : > { %1776 = vmatprep.subr.bf16.mxu0 %v1775_v10  ;;  %v1809_v19 = vpack.c.bf16 %v373_v17, %v361_v16  ;;  %1808 = vmatprep.subr.bf16.mxu1 %v1807_v14  ;;  %v1779_v23 = vpack.c.bf16 %v396_v20, %v384_v18  ;;  %v1811_v24 = vpack.c.bf16 %v398_v22, %v386_v21  ;;  %v383_v25 = vld [vmem:[%s2381_s12 + $0xc0] sm:$0xff]  ;;  %v385_v27 = vld [vmem:[%s2381_s12 + $0xd0] sm:$0xff]  ;;  %v408_v30 = vld [vmem:[%s2381_s12 + $0x188] sm:$0xff] }
  0x69   : > { %1778 = vmatpush1.bf16.msra.mxu0 %v1777_v15  ;;  %v395_v26 = vld [vmem:[%s2381_s12 + $0x120] sm:$0xff]  ;;  %v397_v29 = vld [vmem:[%s2381_s12 + $0x130] sm:$0xff]  ;;  %v420_v31 = vld [vmem:[%s2381_s12 + $0x1e8] sm:$0xff] }
  0x6a   : > { %1810 = vmatpush1.bf16.msra.mxu1 %v1809_v19  ;;  %v1781_v28 = vpack.c.bf16 %v395_v26, %v383_v25  ;;  %1780 = vmatprep.subr.bf16.mxu0 %v1779_v23  ;;  %v1813_v32 = vpack.c.bf16 %v397_v29, %v385_v27  ;;  %v1783_v33 = vpack.c.bf16 %v420_v31, %v408_v30  ;;  %v410_v34 = vld [vmem:[%s2381_s12 + $0x198] sm:$0xff]  ;;  %v407_v36 = vld [vmem:[%s2381_s12 + $0x180] sm:$0xff]  ;;  %v409_v39 = vld [vmem:[%s2381_s12 + $0x190] sm:$0xff] }
  0x6b   : > { %1812 = vmatprep.subr.bf16.mxu1 %v1811_v24  ;;  %v422_v35 = vld [vmem:[%s2381_s12 + $0x1f8] sm:$0xff]  ;;  %v419_v38 = vld [vmem:[%s2381_s12 + $0x1e0] sm:$0xff]  ;;  %v421_v40 = vld [vmem:[%s2381_s12 + $0x1f0] sm:$0xff] }
  0x6c   : > { %v1815_v37 = vpack.c.bf16 %v422_v35, %v410_v34  ;;  %v1785_v41 = vpack.c.bf16 %v419_v38, %v407_v36  ;;  %v432_v42 = vld [vmem:[%s2381_s12 + $0x248] sm:$0xff]  ;;  %v434_v44 = vld [vmem:[%s2381_s12 + $0x258] sm:$0xff]  ;;  %v1817_v45 = vpack.c.bf16 %v421_v40, %v409_v39  ;;  %v431_v48 = vld [vmem:[%s2381_s12 + $0x240] sm:$0xff] }
  0x6d   : > { %1782 = vmatpush1.bf16.msra.mxu0 %v1781_v28  ;;  %v444_v43 = vld [vmem:[%s2381_s12 + $0x2a8] sm:$0xff]  ;;  %v446_v47 = vld [vmem:[%s2381_s12 + $0x2b8] sm:$0xff]  ;;  %v443_v49 = vld [vmem:[%s2381_s12 + $0x2a0] sm:$0xff] }
  0x6e   : > { %1814 = vmatpush1.bf16.msra.mxu1 %v1813_v32  ;;  %1784 = vmatprep.subr.bf16.mxu0 %v1783_v33  ;;  %v1787_v46 = vpack.c.bf16 %v444_v43, %v432_v42  ;;  %v1819_v50 = vpack.c.bf16 %v446_v47, %v434_v44  ;;  %v433_v51 = vld [vmem:[%s2381_s12 + $0x250] sm:$0xff]  ;;  %v456_v53 = vld [vmem:[%s2381_s12 + $0x308] sm:$0xff]  ;;  %v458_v55 = vld [vmem:[%s2381_s12 + $0x318] sm:$0xff]  ;;  %v1789_v57 = vpack.c.bf16 %v443_v49, %v431_v48 }
  0x6f   : > { %1816 = vmatprep.subr.bf16.mxu1 %v1815_v37  ;;  %v445_v52 = vld [vmem:[%s2381_s12 + $0x2b0] sm:$0xff]  ;;  %v468_v54 = vld [vmem:[%s2381_s12 + $0x368] sm:$0xff]  ;;  %v470_v56 = vld [vmem:[%s2381_s12 + $0x378] sm:$0xff] }
  0x70   : > { %v1821_v58 = vpack.c.bf16 %v445_v52, %v433_v51  ;;  %v1791_v59 = vpack.c.bf16 %v468_v54, %v456_v53  ;;  %v455_v60 = vld [vmem:[%s2381_s12 + $0x300] sm:$0xff]  ;;  %v457_v62 = vld [vmem:[%s2381_s12 + $0x310] sm:$0xff]  ;;  %v1823_v63 = vpack.c.bf16 %v470_v56, %v458_v55  ;;  %v480_v1 = vld [vmem:[%s2381_s12 + $0x3c8] sm:$0xff] }
  0x71   : > { %1786 = vmatpush1.bf16.msra.mxu0 %v1785_v41  ;;  %v467_v61 = vld [vmem:[%s2381_s12 + $0x360] sm:$0xff]  ;;  %v469_v0 = vld [vmem:[%s2381_s12 + $0x370] sm:$0xff]  ;;  %v492_v2 = vld [vmem:[%s2381_s12 + $0x428] sm:$0xff] }
  0x72   : > { %1818 = vmatpush1.bf16.msra.mxu1 %v1817_v45  ;;  %1788 = vmatprep.subr.bf16.mxu0 %v1787_v46  ;;  %v482_v3 = vld [vmem:[%s2381_s12 + $0x3d8] sm:$0xff]  ;;  %v1793_v5 = vpack.c.bf16 %v467_v61, %v455_v60  ;;  %v1825_v7 = vpack.c.bf16 %v469_v0, %v457_v62  ;;  %v1795_v8 = vpack.c.bf16 %v492_v2, %v480_v1  ;;  %v479_v9 = vld [vmem:[%s2381_s12 + $0x3c0] sm:$0xff]  ;;  %v481_v11 = vld [vmem:[%s2381_s12 + $0x3d0] sm:$0xff] }
  0x73   : > { %1820 = vmatprep.subr.bf16.mxu1 %v1819_v50  ;;  %v494_v4 = vld [vmem:[%s2381_s12 + $0x438] sm:$0xff]  ;;  %v491_v10 = vld [vmem:[%s2381_s12 + $0x420] sm:$0xff]  ;;  %v493_v13 = vld [vmem:[%s2381_s12 + $0x430] sm:$0xff] }
  0x74   : > { %v1827_v12 = vpack.c.bf16 %v494_v4, %v482_v3  ;;  %v504_v14 = vld [vmem:[%s2381_s12 + $0x488] sm:$0xff]  ;;  %v506_v16 = vld [vmem:[%s2381_s12 + $0x498] sm:$0xff]  ;;  %v1797_v18 = vpack.c.bf16 %v491_v10, %v479_v9  ;;  %v1829_v19 = vpack.c.bf16 %v493_v13, %v481_v11  ;;  %v503_v21 = vld [vmem:[%s2381_s12 + $0x480] sm:$0xff] }
  0x75   : > { %1790 = vmatpush1.bf16.msra.mxu0 %v1789_v57  ;;  %v516_v15 = vld [vmem:[%s2381_s12 + $0x4e8] sm:$0xff]  ;;  %v518_v17 = vld [vmem:[%s2381_s12 + $0x4f8] sm:$0xff]  ;;  %v515_v22 = vld [vmem:[%s2381_s12 + $0x4e0] sm:$0xff] }
  0x76   : > { %1822 = vmatpush1.bf16.msra.mxu1 %v1821_v58  ;;  %1792 = vmatprep.subr.bf16.mxu0 %v1791_v59  ;;  %v1799_v20 = vpack.c.bf16 %v516_v15, %v504_v14  ;;  %v505_v23 = vld [vmem:[%s2381_s12 + $0x490] sm:$0xff]  ;;  %v1831_v24 = vpack.c.bf16 %v518_v17, %v506_v16  ;;  %v528_v26 = vld [vmem:[%s2381_s12 + $0x548] sm:$0xff]  ;;  %v530_v28 = vld [vmem:[%s2381_s12 + $0x558] sm:$0xff]  ;;  %v1801_v30 = vpack.c.bf16 %v515_v22, %v503_v21 }
  0x77   : > { %1824 = vmatprep.subr.bf16.mxu1 %v1823_v63  ;;  %v517_v25 = vld [vmem:[%s2381_s12 + $0x4f0] sm:$0xff]  ;;  %v540_v27 = vld [vmem:[%s2381_s12 + $0x5a8] sm:$0xff]  ;;  %v542_v29 = vld [vmem:[%s2381_s12 + $0x5b8] sm:$0xff] }
  0x78   : > { %v1833_v31 = vpack.c.bf16 %v517_v25, %v505_v23  ;;  %v1803_v32 = vpack.c.bf16 %v540_v27, %v528_v26  ;;  %v527_v33 = vld [vmem:[%s2381_s12 + $0x540] sm:$0xff]  ;;  %v529_v35 = vld [vmem:[%s2381_s12 + $0x550] sm:$0xff]  ;;  %v1835_v36 = vpack.c.bf16 %v542_v29, %v530_v28  ;;  %v364_v38 = vld [vmem:[%s2381_s12 + $0x28] sm:$0xff] }
  0x79   : > { %1794 = vmatpush1.bf16.msra.mxu0 %v1793_v5  ;;  %v539_v34 = vld [vmem:[%s2381_s12 + $0x5a0] sm:$0xff]  ;;  %v541_v37 = vld [vmem:[%s2381_s12 + $0x5b0] sm:$0xff]  ;;  %v376_v39 = vld [vmem:[%s2381_s12 + $0x88] sm:$0xff] }
  0x7a   : > { %1826 = vmatpush1.bf16.msra.mxu1 %v1825_v7  ;;  %1796 = vmatprep.subr.bf16.mxu0 %v1795_v8  ;;  %v366_v40 = vld [vmem:[%s2381_s12 + $0x38] sm:$0xff]  ;;  %v1805_v42 = vpack.c.bf16 %v539_v34, %v527_v33  ;;  %v1837_v43 = vpack.c.bf16 %v541_v37, %v529_v35  ;;  %v1839_v44 = vpack.c.bf16 %v376_v39, %v364_v38  ;;  %v363_v45 = vld [vmem:[%s2381_s12 + $0x20] sm:$0xff]  ;;  %v365_v47 = vld [vmem:[%s2381_s12 + $0x30] sm:$0xff] }
  0x7b   : > { %1828 = vmatprep.subr.bf16.mxu1 %v1827_v12  ;;  %v378_v41 = vld [vmem:[%s2381_s12 + $0x98] sm:$0xff]  ;;  %v375_v46 = vld [vmem:[%s2381_s12 + $0x80] sm:$0xff]  ;;  %v377_v49 = vld [vmem:[%s2381_s12 + $0x90] sm:$0xff] }
  0x7c   : > { %v1871_v48 = vpack.c.bf16 %v378_v41, %v366_v40  ;;  %v388_v50 = vld [vmem:[%s2381_s12 + $0xe8] sm:$0xff]  ;;  %v390_v52 = vld [vmem:[%s2381_s12 + $0xf8] sm:$0xff]  ;;  %v2465_v54 = vld [vmem:[%s352_s16] sm:$0xff]  ;;  %v1841_v55 = vpack.c.bf16 %v375_v46, %v363_v45  ;;  %v1873_v56 = vpack.c.bf16 %v377_v49, %v365_v47 }
  0x7d   : > { %1798 = vmatpush1.bf16.msra.mxu0 %v1797_v18  ;;  %v400_v51 = vld [vmem:[%s2381_s12 + $0x148] sm:$0xff]  ;;  %v402_v53 = vld [vmem:[%s2381_s12 + $0x158] sm:$0xff]  ;;  %v387_v58 = vld [vmem:[%s2381_s12 + $0xe0] sm:$0xff] }
  0x7e   : > { %1830 = vmatpush1.bf16.msra.mxu1 %v1829_v19  ;;  %1800 = vmatprep.subr.bf16.mxu0 %v1799_v20  ;;  %v1843_v57 = vpack.c.bf16 %v400_v51, %v388_v50  ;;  %v399_v59 = vld [vmem:[%s2381_s12 + $0x140] sm:$0xff]  ;;  %v389_v60 = vld [vmem:[%s2381_s12 + $0xf0] sm:$0xff]  ;;  %v1875_v61 = vpack.c.bf16 %v402_v53, %v390_v52  ;;  %v412_v63 = vld [vmem:[%s2381_s12 + $0x1a8] sm:$0xff] }
  0x7f   : > { %1832 = vmatprep.subr.bf16.mxu1 %v1831_v24  ;;  %v401_v62 = vld [vmem:[%s2381_s12 + $0x150] sm:$0xff]  ;;  %v424_v0 = vld [vmem:[%s2381_s12 + $0x208] sm:$0xff]  ;;  %v414_v1 = vld [vmem:[%s2381_s12 + $0x1b8] sm:$0xff]  ;;  %v1845_v3 = vpack.c.bf16 %v399_v59, %v387_v58 }
  0x80   : > { %v426_v2 = vld [vmem:[%s2381_s12 + $0x218] sm:$0xff]  ;;  %v1877_v4 = vpack.c.bf16 %v401_v62, %v389_v60  ;;  %v1847_v5 = vpack.c.bf16 %v424_v0, %v412_v63  ;;  %v411_v7 = vld [vmem:[%s2381_s12 + $0x1a0] sm:$0xff]  ;;  %v413_v9 = vld [vmem:[%s2381_s12 + $0x1b0] sm:$0xff] }
  0x81   : > { %1802 = vmatpush1.bf16.msra.mxu0 %v1801_v30  ;;  %v423_v8 = vld [vmem:[%s2381_s12 + $0x200] sm:$0xff]  ;;  %v1879_v10 = vpack.c.bf16 %v426_v2, %v414_v1  ;;  %v425_v11 = vld [vmem:[%s2381_s12 + $0x210] sm:$0xff]  ;;  %v436_v12 = vld [vmem:[%s2381_s12 + $0x268] sm:$0xff] }
  0x82   : > { %1834 = vmatpush1.bf16.msra.mxu1 %v1833_v31  ;;  %1804 = vmatprep.subr.bf16.mxu0 %v1803_v32  ;;  %v448_v13 = vld [vmem:[%s2381_s12 + $0x2c8] sm:$0xff]  ;;  %v438_v14 = vld [vmem:[%s2381_s12 + $0x278] sm:$0xff]  ;;  %v1849_v16 = vpack.c.bf16 %v423_v8, %v411_v7  ;;  %v1881_v17 = vpack.c.bf16 %v425_v11, %v413_v9  ;;  %v435_v19 = vld [vmem:[%s2381_s12 + $0x260] sm:$0xff] }
  0x83   : > { %1836 = vmatprep.subr.bf16.mxu1 %v1835_v36  ;;  %v450_v15 = vld [vmem:[%s2381_s12 + $0x2d8] sm:$0xff]  ;;  %v1851_v18 = vpack.c.bf16 %v448_v13, %v436_v12  ;;  %v447_v20 = vld [vmem:[%s2381_s12 + $0x2c0] sm:$0xff]  ;;  %v437_v21 = vld [vmem:[%s2381_s12 + $0x270] sm:$0xff] }
  0x84   : > { %v1883_v22 = vpack.c.bf16 %v450_v15, %v438_v14  ;;  %v449_v23 = vld [vmem:[%s2381_s12 + $0x2d0] sm:$0xff]  ;;  %v460_v24 = vld [vmem:[%s2381_s12 + $0x328] sm:$0xff]  ;;  %v462_v26 = vld [vmem:[%s2381_s12 + $0x338] sm:$0xff]  ;;  %v1853_v28 = vpack.c.bf16 %v447_v20, %v435_v19 }
  0x85   : > { %1806 = vmatpush1.bf16.msra.mxu0 %v1805_v42  ;;  %v472_v25 = vld [vmem:[%s2381_s12 + $0x388] sm:$0xff]  ;;  %v474_v27 = vld [vmem:[%s2381_s12 + $0x398] sm:$0xff]  ;;  %v1885_v29 = vpack.c.bf16 %v449_v23, %v437_v21  ;;  %v459_v31 = vld [vmem:[%s2381_s12 + $0x320] sm:$0xff] }
  0x86   : > { %1838 = vmatpush1.bf16.msra.mxu1 %v1837_v43  ;;  %1840 = vmatprep.subr.bf16.mxu0 %v1839_v44  ;;  %v1855_v30 = vpack.c.bf16 %v472_v25, %v460_v24  ;;  %v471_v32 = vld [vmem:[%s2381_s12 + $0x380] sm:$0xff]  ;;  %v461_v33 = vld [vmem:[%s2381_s12 + $0x330] sm:$0xff]  ;;  %v1887_v34 = vpack.c.bf16 %v474_v27, %v462_v26  ;;  %v484_v36 = vld [vmem:[%s2381_s12 + $0x3e8] sm:$0xff] }
  0x87   : > { %1872 = vmatprep.subr.bf16.mxu1 %v1871_v48  ;;  %v473_v35 = vld [vmem:[%s2381_s12 + $0x390] sm:$0xff]  ;;  %v496_v37 = vld [vmem:[%s2381_s12 + $0x448] sm:$0xff]  ;;  %v486_v38 = vld [vmem:[%s2381_s12 + $0x3f8] sm:$0xff]  ;;  %v1857_v40 = vpack.c.bf16 %v471_v32, %v459_v31 }
  0x88   : > { %665 = vmatmul.mubr.f32.vlgmr.msra.gmra.mrb[0].mxu0 %v2465_v54  ;;  %v498_v39 = vld [vmem:[%s2381_s12 + $0x458] sm:$0xff]  ;;  %v1889_v41 = vpack.c.bf16 %v473_v35, %v461_v33  ;;  %v1859_v42 = vpack.c.bf16 %v496_v37, %v484_v36  ;;  %v483_v43 = vld [vmem:[%s2381_s12 + $0x3e0] sm:$0xff]  ;;  %v485_v45 = vld [vmem:[%s2381_s12 + $0x3f0] sm:$0xff] }
  0x89   : > { %736 = vmatmul.mubr.f32.vlgmr.msra.gmra.mrb[0].mxu1 %v2465_v54  ;;  %1842 = vmatpush1.bf16.msra.mxu0 %v1841_v55  ;;  %v495_v44 = vld [vmem:[%s2381_s12 + $0x440] sm:$0xff]  ;;  %v1891_v46 = vpack.c.bf16 %v498_v39, %v486_v38  ;;  %v497_v47 = vld [vmem:[%s2381_s12 + $0x450] sm:$0xff]  ;;  %v508_v48 = vld [vmem:[%s2381_s12 + $0x4a8] sm:$0xff] }
  0x8a   : > { %1874 = vmatpush1.bf16.msra.mxu1 %v1873_v56  ;;  %1844 = vmatprep.subr.bf16.mxu0 %v1843_v57  ;;  %v520_v49 = vld [vmem:[%s2381_s12 + $0x508] sm:$0xff]  ;;  %v510_v50 = vld [vmem:[%s2381_s12 + $0x4b8] sm:$0xff]  ;;  %v1861_v52 = vpack.c.bf16 %v495_v44, %v483_v43  ;;  %v1893_v53 = vpack.c.bf16 %v497_v47, %v485_v45  ;;  %v507_v56 = vld [vmem:[%s2381_s12 + $0x4a0] sm:$0xff] }
  0x8b   : > { %1876 = vmatprep.subr.bf16.mxu1 %v1875_v61  ;;  %806 = vmatprep.mubr.f32.mxu0 %v2197_v6  ;;  %v522_v51 = vld [vmem:[%s2381_s12 + $0x518] sm:$0xff]  ;;  %v1863_v55 = vpack.c.bf16 %v520_v49, %v508_v48  ;;  %v519_v57 = vld [vmem:[%s2381_s12 + $0x500] sm:$0xff]  ;;  %v509_v58 = vld [vmem:[%s2381_s12 + $0x4b0] sm:$0xff] }
  0x8c   : > { %877 = vmatprep.mubr.f32.mxu1 %v2197_v6  ;;  %v1895_v59 = vpack.c.bf16 %v522_v51, %v510_v50  ;;  %v521_v60 = vld [vmem:[%s2381_s12 + $0x510] sm:$0xff]  ;;  %v532_v61 = vld [vmem:[%s2381_s12 + $0x568] sm:$0xff]  ;;  %v534_v63 = vld [vmem:[%s2381_s12 + $0x578] sm:$0xff]  ;;  %v1865_v1 = vpack.c.bf16 %v519_v57, %v507_v56 }
  0x8d   : > { %1846 = vmatpush1.bf16.msra.mxu0 %v1845_v3  ;;  %v544_v62 = vld [vmem:[%s2381_s12 + $0x5c8] sm:$0xff]  ;;  %v546_v0 = vld [vmem:[%s2381_s12 + $0x5d8] sm:$0xff]  ;;  %v1897_v2 = vpack.c.bf16 %v521_v60, %v509_v58  ;;  %v533_v7 = vld [vmem:[%s2381_s12 + $0x570] sm:$0xff] }
  0x8e   : > { %1878 = vmatpush1.bf16.msra.mxu1 %v1877_v4  ;;  %1848 = vmatprep.subr.bf16.mxu0 %v1847_v5  ;;  %v1867_v3 = vpack.c.bf16 %v544_v62, %v532_v61  ;;  %v531_v4 = vld [vmem:[%s2381_s12 + $0x560] sm:$0xff]  ;;  %v1899_v8 = vpack.c.bf16 %v546_v0, %v534_v63  ;;  %v545_v9 = vld [vmem:[%s2381_s12 + $0x5d0] sm:$0xff]  ;;  %v380_v11 = vld [vmem:[%s2381_s12 + $0xa8] sm:$0xff] }
  0x8f   : > { %1880 = vmatprep.subr.bf16.mxu1 %v1879_v10  ;;  %v543_v5 = vld [vmem:[%s2381_s12 + $0x5c0] sm:$0xff]  ;;  %v368_v10 = vld [vmem:[%s2381_s12 + $0x48] sm:$0xff]  ;;  %v370_v12 = vld [vmem:[%s2381_s12 + $0x58] sm:$0xff]  ;;  %v1901_v15 = vpack.c.bf16 %v545_v9, %v533_v7 }
  0x90   : > { %v382_v13 = vld [vmem:[%s2381_s12 + $0xb8] sm:$0xff]  ;;  %v1869_v14 = vpack.c.bf16 %v543_v5, %v531_v4  ;;  %v369_v19 = vld [vmem:[%s2381_s12 + $0x50] sm:$0xff]  ;;  %v404_v23 = vld [vmem:[%s2381_s12 + $0x168] sm:$0xff] }
  0x91   : > { %1850 = vmatpush1.bf16.msra.mxu0 %v1849_v16  ;;  %v1903_v16 = vpack.c.bf16 %v380_v11, %v368_v10  ;;  %v1935_v20 = vpack.c.bf16 %v382_v13, %v370_v12  ;;  %v381_v21 = vld [vmem:[%s2381_s12 + $0xb0] sm:$0xff]  ;;  %v394_v24 = vld [vmem:[%s2381_s12 + $0x118] sm:$0xff]  ;;  %v428_v35 = vld [vmem:[%s2381_s12 + $0x228] sm:$0xff] }
  0x92   : > { %1882 = vmatpush1.bf16.msra.mxu1 %v1881_v17  ;;  %1852 = vmatprep.subr.bf16.mxu0 %v1851_v18  ;;  %v367_v17 = vld [vmem:[%s2381_s12 + $0x40] sm:$0xff]  ;;  %v406_v25 = vld [vmem:[%s2381_s12 + $0x178] sm:$0xff]  ;;  %v1937_v27 = vpack.c.bf16 %v381_v21, %v369_v19  ;;  %v393_v31 = vld [vmem:[%s2381_s12 + $0x110] sm:$0xff] }
  0x93   : > { %1884 = vmatprep.subr.bf16.mxu1 %v1883_v22  ;;  %v379_v18 = vld [vmem:[%s2381_s12 + $0xa0] sm:$0xff]  ;;  %v392_v22 = vld [vmem:[%s2381_s12 + $0x108] sm:$0xff]  ;;  %v1939_v32 = vpack.c.bf16 %v406_v25, %v394_v24  ;;  %v405_v33 = vld [vmem:[%s2381_s12 + $0x170] sm:$0xff] }
  0x94   : > { %v1905_v26 = vpack.c.bf16 %v379_v18, %v367_v17  ;;  %v418_v36 = vld [vmem:[%s2381_s12 + $0x1d8] sm:$0xff]  ;;  %v1941_v39 = vpack.c.bf16 %v405_v33, %v393_v31  ;;  %v417_v43 = vld [vmem:[%s2381_s12 + $0x1d0] sm:$0xff]  ;;  %v452_v47 = vld [vmem:[%s2381_s12 + $0x2e8] sm:$0xff] }
  0x95   : > { %1854 = vmatpush1.bf16.msra.mxu0 %v1853_v28  ;;  %v1907_v28 = vpack.c.bf16 %v404_v23, %v392_v22  ;;  %v430_v37 = vld [vmem:[%s2381_s12 + $0x238] sm:$0xff]  ;;  %v429_v45 = vld [vmem:[%s2381_s12 + $0x230] sm:$0xff]  ;;  %v476_v60 = vld [vmem:[%s2381_s12 + $0x3a8] sm:$0xff] }
  0x96   : > { %1886 = vmatpush1.bf16.msra.mxu1 %v1885_v29  ;;  %1856 = vmatprep.subr.bf16.mxu0 %v1855_v30  ;;  %v391_v29 = vld [vmem:[%s2381_s12 + $0x100] sm:$0xff]  ;;  %v1943_v44 = vpack.c.bf16 %v430_v37, %v418_v36  ;;  %v442_v48 = vld [vmem:[%s2381_s12 + $0x298] sm:$0xff]  ;;  %v1945_v51 = vpack.c.bf16 %v429_v45, %v417_v43  ;;  %v441_v56 = vld [vmem:[%s2381_s12 + $0x290] sm:$0xff] }
  0x97   : > { %1888 = vmatprep.subr.bf16.mxu1 %v1887_v34  ;;  %v403_v30 = vld [vmem:[%s2381_s12 + $0x160] sm:$0xff]  ;;  %v416_v34 = vld [vmem:[%s2381_s12 + $0x1c8] sm:$0xff]  ;;  %v454_v49 = vld [vmem:[%s2381_s12 + $0x2f8] sm:$0xff] }
  0x98   : > { %v1909_v38 = vpack.c.bf16 %v403_v30, %v391_v29  ;;  %v1947_v57 = vpack.c.bf16 %v454_v49, %v442_v48  ;;  %v453_v58 = vld [vmem:[%s2381_s12 + $0x2f0] sm:$0xff]  ;;  %v466_v61 = vld [vmem:[%s2381_s12 + $0x358] sm:$0xff]  ;;  %v500_v9 = vld [vmem:[%s2381_s12 + $0x468] sm:$0xff] }
  0x99   : > { %1858 = vmatpush1.bf16.msra.mxu0 %v1857_v40  ;;  %v1911_v40 = vpack.c.bf16 %v428_v35, %v416_v34  ;;  %v478_v62 = vld [vmem:[%s2381_s12 + $0x3b8] sm:$0xff]  ;;  %v1949_v0 = vpack.c.bf16 %v453_v58, %v441_v56  ;;  %v465_v4 = vld [vmem:[%s2381_s12 + $0x350] sm:$0xff]  ;;  %v524_v21 = vld [vmem:[%s2381_s12 + $0x528] sm:$0xff] }
  0x9a   : > { %1890 = vmatpush1.bf16.msra.mxu1 %v1889_v41  ;;  %1860 = vmatprep.subr.bf16.mxu0 %v1859_v42  ;;  %v415_v41 = vld [vmem:[%s2381_s12 + $0x1c0] sm:$0xff]  ;;  %v1951_v5 = vpack.c.bf16 %v478_v62, %v466_v61  ;;  %v477_v7 = vld [vmem:[%s2381_s12 + $0x3b0] sm:$0xff]  ;;  %v490_v10 = vld [vmem:[%s2381_s12 + $0x418] sm:$0xff] }
  0x9b   : > { %1892 = vmatprep.subr.bf16.mxu1 %v1891_v46  ;;  %v427_v42 = vld [vmem:[%s2381_s12 + $0x220] sm:$0xff]  ;;  %v440_v46 = vld [vmem:[%s2381_s12 + $0x288] sm:$0xff]  ;;  %v502_v11 = vld [vmem:[%s2381_s12 + $0x478] sm:$0xff]  ;;  %v1953_v13 = vpack.c.bf16 %v477_v7, %v465_v4 }
  0x9c   : > { %v1913_v50 = vpack.c.bf16 %v427_v42, %v415_v41  ;;  %v489_v17 = vld [vmem:[%s2381_s12 + $0x410] sm:$0xff]  ;;  %v1955_v18 = vpack.c.bf16 %v502_v11, %v490_v10  ;;  %v514_v22 = vld [vmem:[%s2381_s12 + $0x4d8] sm:$0xff]  ;;  %v548_v33 = vld [vmem:[%s2381_s12 + $0x5e8] sm:$0xff] }
  0x9d   : > { %1862 = vmatpush1.bf16.msra.mxu0 %v1861_v52  ;;  %v1915_v52 = vpack.c.bf16 %v452_v47, %v440_v46  ;;  %v501_v19 = vld [vmem:[%s2381_s12 + $0x470] sm:$0xff]  ;;  %v526_v23 = vld [vmem:[%s2381_s12 + $0x538] sm:$0xff]  ;;  %v555_v46 = vld [vmem:[#allocation6 + $0x18] sm:$0xff] }
  0x9e   : > { %1894 = vmatpush1.bf16.msra.mxu1 %v1893_v53  ;;  %1864 = vmatprep.subr.bf16.mxu0 %v1863_v55  ;;  %v439_v53 = vld [vmem:[%s2381_s12 + $0x280] sm:$0xff]  ;;  %v1957_v25 = vpack.c.bf16 %v501_v19, %v489_v17  ;;  %v513_v29 = vld [vmem:[%s2381_s12 + $0x4d0] sm:$0xff]  ;;  %v1959_v30 = vpack.c.bf16 %v526_v23, %v514_v22  ;;  %v538_v34 = vld [vmem:[%s2381_s12 + $0x598] sm:$0xff] }
  0x9f   : > { %1896 = vmatprep.subr.bf16.mxu1 %v1895_v59  ;;  %v451_v55 = vld [vmem:[%s2381_s12 + $0x2e0] sm:$0xff]  ;;  %v464_v59 = vld [vmem:[%s2381_s12 + $0x348] sm:$0xff]  ;;  %v525_v31 = vld [vmem:[%s2381_s12 + $0x530] sm:$0xff] }
  0xa0   : > { %v1917_v63 = vpack.c.bf16 %v451_v55, %v439_v53  ;;  %v550_v35 = vld [vmem:[%s2381_s12 + $0x5f8] sm:$0xff]  ;;  %v1961_v37 = vpack.c.bf16 %v525_v31, %v513_v29  ;;  %v537_v43 = vld [vmem:[%s2381_s12 + $0x590] sm:$0xff]  ;;  %v567_v47 = vld [vmem:[#allocation6 + $0x78] sm:$0xff] }
  0xa1   : > { %1866 = vmatpush1.bf16.msra.mxu0 %v1865_v1  ;;  %v1919_v1 = vpack.c.bf16 %v476_v60, %v464_v59  ;;  %v553_v41 = vld [vmem:[#allocation6 + $0x8] sm:$0xff]  ;;  %v1963_v42 = vpack.c.bf16 %v550_v35, %v538_v34  ;;  %v554_v53 = vld [vmem:[#allocation6 + $0x10] sm:$0xff]  ;;  %v1975_v55 = vpack.c.bf16 %v567_v47, %v555_v46  ;;  %v579_v59 = vld [vmem:[#allocation6 + $0xd8] sm:$0xff] }
  0xa2   : > { %1898 = vmatpush1.bf16.msra.mxu1 %v1897_v2  ;;  %1868 = vmatprep.subr.bf16.mxu0 %v1867_v3  ;;  %v463_v2 = vld [vmem:[%s2381_s12 + $0x340] sm:$0xff]  ;;  %v565_v45 = vld [vmem:[#allocation6 + $0x68] sm:$0xff]  ;;  %v591_v60 = vld [vmem:[#allocation6 + $0x138] sm:$0xff] }
  0xa3   : > { %1900 = vmatprep.subr.bf16.mxu1 %v1899_v8  ;;  %v475_v3 = vld [vmem:[%s2381_s12 + $0x3a0] sm:$0xff]  ;;  %v488_v8 = vld [vmem:[%s2381_s12 + $0x408] sm:$0xff]  ;;  %v589_v58 = vld [vmem:[#allocation6 + $0x128] sm:$0xff] }
  0xa4   : > { %v1921_v12 = vpack.c.bf16 %v475_v3, %v463_v2  ;;  %v566_v56 = vld [vmem:[#allocation6 + $0x70] sm:$0xff]  ;;  %v1979_v3 = vpack.c.bf16 %v591_v60, %v579_v59  ;;  %v569_v7 = vld [vmem:[#allocation6 + $0x88] sm:$0xff] }
  0xa5   : > { %1870 = vmatpush1.bf16.msra.mxu0 %v1869_v14  ;;  %v1923_v14 = vpack.c.bf16 %v500_v9, %v488_v8  ;;  %v1977_v62 = vpack.c.bf16 %v566_v56, %v554_v53  ;;  %v578_v2 = vld [vmem:[#allocation6 + $0xd0] sm:$0xff]  ;;  %v559_v8 = vld [vmem:[#allocation6 + $0x38] sm:$0xff]  ;;  %v593_v19 = vld [vmem:[#allocation6 + $0x148] sm:$0xff] }
  0xa6   : > { %1902 = vmatpush1.bf16.msra.mxu1 %v1901_v15  ;;  %1904 = vmatprep.subr.bf16.mxu0 %v1903_v16  ;;  %v487_v15 = vld [vmem:[%s2381_s12 + $0x400] sm:$0xff]  ;;  %v571_v9 = vld [vmem:[#allocation6 + $0x98] sm:$0xff]  ;;  %v573_v31 = vld [vmem:[#allocation6 + $0xa8] sm:$0xff] }
  0xa7   : > { %1936 = vmatprep.subr.bf16.mxu1 %v1935_v20  ;;  %v499_v16 = vld [vmem:[%s2381_s12 + $0x460] sm:$0xff]  ;;  %v512_v20 = vld [vmem:[%s2381_s12 + $0x4c8] sm:$0xff] }
  0xa8   : > { %807 = vmatmul.mubr.f32.vlgmr.msra.gmra.mrb[2].mxu0 %v2465_v54  ;;  %v1925_v24 = vpack.c.bf16 %v499_v16, %v487_v15  ;;  %v590_v4 = vld [vmem:[#allocation6 + $0x130] sm:$0xff]  ;;  %v1991_v16 = vpack.c.bf16 %v571_v9, %v559_v8 }
  0xa9   : > { %878 = vmatmul.mubr.f32.vlgmr.msra.gmra.mrb[2].mxu1 %v2465_v54  ;;  %1906 = vmatpush1.bf16.msra.mxu0 %v1905_v26  ;;  %v1927_v26 = vpack.c.bf16 %v524_v21, %v512_v20  ;;  %v1981_v11 = vpack.c.bf16 %v590_v4, %v578_v2  ;;  %v558_v15 = vld [vmem:[#allocation6 + $0x30] sm:$0xff]  ;;  %v595_v20 = vld [vmem:[#allocation6 + $0x158] sm:$0xff] }
  0xaa   : > { %1938 = vmatpush1.bf16.msra.mxu1 %v1937_v27  ;;  %1908 = vmatprep.subr.bf16.mxu0 %v1907_v28  ;;  %v511_v27 = vld [vmem:[%s2381_s12 + $0x4c0] sm:$0xff] }
  0xab   : > { %1940 = vmatprep.subr.bf16.mxu1 %v1939_v32  ;;  %948 = vmatprep.mubr.f32.mxu0 %v2197_v6  ;;  %v523_v28 = vld [vmem:[%s2381_s12 + $0x520] sm:$0xff]  ;;  %v536_v32 = vld [vmem:[%s2381_s12 + $0x588] sm:$0xff] }
  0xac   : > { %1019 = vmatprep.mubr.f32.mxu1 %v2197_v6  ;;  %v1929_v36 = vpack.c.bf16 %v523_v28, %v511_v27  ;;  %v570_v17 = vld [vmem:[#allocation6 + $0x90] sm:$0xff] }
  0xad   : > { %1910 = vmatpush1.bf16.msra.mxu0 %v1909_v38  ;;  %v1931_v38 = vpack.c.bf16 %v548_v33, %v536_v32  ;;  %v551_v21 = vld [vmem:[%s2348_s11] sm:$0xff]  ;;  %v1993_v23 = vpack.c.bf16 %v570_v17, %v558_v15  ;;  %v563_v32 = vld [vmem:[#allocation6 + $0x58] sm:$0xff] }
  0xae   : > { %1942 = vmatpush1.bf16.msra.mxu1 %v1941_v39  ;;  %1912 = vmatprep.subr.bf16.mxu0 %v1911_v40  ;;  %v535_v39 = vld [vmem:[%s2381_s12 + $0x580] sm:$0xff]  ;;  %v575_v33 = vld [vmem:[#allocation6 + $0xb8] sm:$0xff] }
  0xaf   : > { %1944 = vmatprep.subr.bf16.mxu1 %v1943_v44  ;;  %v547_v40 = vld [vmem:[%s2381_s12 + $0x5e0] sm:$0xff]  ;;  %v549_v44 = vld [vmem:[%s2381_s12 + $0x5f0] sm:$0xff] }
  0xb0   : > { %v1933_v48 = vpack.c.bf16 %v547_v40, %v535_v39  ;;  %v1965_v49 = vpack.c.bf16 %v549_v44, %v537_v43  ;;  %v582_v27 = vld [vmem:[#allocation6 + $0xf0] sm:$0xff]  ;;  %v2007_v40 = vpack.c.bf16 %v575_v33, %v563_v32  ;;  %v597_v43 = vld [vmem:[#allocation6 + $0x168] sm:$0xff]  ;;  %v587_v44 = vld [vmem:[#allocation6 + $0x118] sm:$0xff] }
  0xb1   : > { %1914 = vmatpush1.bf16.msra.mxu0 %v1913_v50  ;;  %v1967_v50 = vpack.c.bf16 %v565_v45, %v553_v41  ;;  %v594_v29 = vld [vmem:[#allocation6 + $0x150] sm:$0xff]  ;;  %v599_v45 = vld [vmem:[#allocation6 + $0x178] sm:$0xff] }
  0xb2   : > { %1946 = vmatpush1.bf16.msra.mxu1 %v1945_v51  ;;  %1916 = vmatprep.subr.bf16.mxu0 %v1915_v52  ;;  %v552_v51 = vld [vmem:[#allocation6] sm:$0xff]  ;;  %v1997_v35 = vpack.c.bf16 %v594_v29, %v582_v27  ;;  %v562_v39 = vld [vmem:[#allocation6 + $0x50] sm:$0xff]  ;;  %v1457_v29 = vld [vmem:[%s2663_s6 + $0x8] sm:$0xf] }
  0xb3   : > { %1948 = vmatprep.subr.bf16.mxu1 %v1947_v57  ;;  %v564_v52 = vld [vmem:[#allocation6 + $0x60] sm:$0xff]  ;;  %v577_v57 = vld [vmem:[#allocation6 + $0xc8] sm:$0xff]  ;;  %v574_v41 = vld [vmem:[#allocation6 + $0xb0] sm:$0xff] }
  0xb4   : > { %v1969_v61 = vpack.c.bf16 %v564_v52, %v552_v51  ;;  %v2009_v47 = vpack.c.bf16 %v574_v41, %v562_v39  ;;  %v2011_v51 = vpack.c.bf16 %v599_v45, %v587_v44  ;;  %v586_v52 = vld [vmem:[#allocation6 + $0x110] sm:$0xff] }
  0xb5   : > { %1918 = vmatpush1.bf16.msra.mxu0 %v1917_v63  ;;  %v1971_v63 = vpack.c.bf16 %v589_v58, %v577_v57  ;;  %v598_v53 = vld [vmem:[#allocation6 + $0x170] sm:$0xff]  ;;  %v1460_v57 = vlaneseq }
  0xb6   : > { %1950 = vmatpush1.bf16.msra.mxu1 %v1949_v0  ;;  %1920 = vmatprep.subr.bf16.mxu0 %v1919_v1  ;;  %v576_v0 = vld [vmem:[#allocation6 + $0xc0] sm:$0xff]  ;;  %v2013_v56 = vpack.c.bf16 %v598_v53, %v586_v52  ;;  %v1456_v60 = vld [vmem:[%s2663_s6] sm:$0xff] }
  0xb7   : > { %1952 = vmatprep.subr.bf16.mxu1 %v1951_v5  ;;  %v588_v1 = vld [vmem:[#allocation6 + $0x120] sm:$0xff]  ;;  %v557_v5 = vld [vmem:[#allocation6 + $0x28] sm:$0xff]  ;;  %v1461_v58 = vshrl.u32 %v1460_v57, 7  ;;  %v1590_v44 = vand.u32 127, %v1460_v57 }
  0xb8   : > { %v1973_v10 = vpack.c.bf16 %v588_v1, %v576_v0 }
  0xb9   : > { %1922 = vmatpush1.bf16.msra.mxu0 %v1921_v12  ;;  %v1983_v12 = vpack.c.bf16 %v569_v7, %v557_v5  ;;  %v1462_v59 = vsub.s32 0, %v1461_v58  ;;  %v1478_v8 = vsub.s32 4, %v1461_v58  ;;  %v1486_v17 = vsub.s32 6, %v1461_v58 }
  0xba   : > { %1954 = vmatpush1.bf16.msra.mxu1 %v1953_v13  ;;  %1924 = vmatprep.subr.bf16.mxu0 %v1923_v14  ;;  %v556_v13 = vld [vmem:[#allocation6 + $0x20] sm:$0xff] }
  0xbb   : > { %1956 = vmatprep.subr.bf16.mxu1 %v1955_v18  ;;  %v568_v14 = vld [vmem:[#allocation6 + $0x80] sm:$0xff]  ;;  %v581_v18 = vld [vmem:[#allocation6 + $0xe8] sm:$0xff]  ;;  %v1463_v0 = vrot.slane %v1456_v60, %v1462_v59 }
  0xbc   : > { %v1985_v22 = vpack.c.bf16 %v568_v14, %v556_v13 }
  0xbd   : > { %1926 = vmatpush1.bf16.msra.mxu0 %v1925_v24  ;;  %v1987_v24 = vpack.c.bf16 %v593_v19, %v581_v18  ;;  %v1479_v19 = vrot.slane %v1456_v60, %v1478_v8 }
  0xbe   : > { %1958 = vmatpush1.bf16.msra.mxu1 %v1957_v25  ;;  %1928 = vmatprep.subr.bf16.mxu0 %v1927_v26  ;;  %v580_v25 = vld [vmem:[#allocation6 + $0xe0] sm:$0xff] }
  0xbf   : > { %1960 = vmatprep.subr.bf16.mxu1 %v1959_v30  ;;  %v592_v26 = vld [vmem:[#allocation6 + $0x140] sm:$0xff]  ;;  %v561_v30 = vld [vmem:[#allocation6 + $0x48] sm:$0xff] }
  0xc0   : > { %v1989_v34 = vpack.c.bf16 %v592_v26, %v580_v25 }
  0xc1   : > { %1930 = vmatpush1.bf16.msra.mxu0 %v1929_v36  ;;  %v1999_v36 = vpack.c.bf16 %v573_v31, %v561_v30 }
  0xc2   : > { %1962 = vmatpush1.bf16.msra.mxu1 %v1961_v37  ;;  %1932 = vmatprep.subr.bf16.mxu0 %v1931_v38  ;;  %v560_v37 = vld [vmem:[#allocation6 + $0x40] sm:$0xff] }
  0xc3   : > { %1964 = vmatprep.subr.bf16.mxu1 %v1963_v42  ;;  %v572_v38 = vld [vmem:[#allocation6 + $0xa0] sm:$0xff]  ;;  %v585_v42 = vld [vmem:[#allocation6 + $0x108] sm:$0xff] }
  0xc4   : > { %v2001_v46 = vpack.c.bf16 %v572_v38, %v560_v37 }
  0xc5   : > { %1934 = vmatpush1.bf16.msra.mxu0 %v1933_v48  ;;  %v2003_v48 = vpack.c.bf16 %v597_v43, %v585_v42 }
  0xc6   : > { %1966 = vmatpush1.bf16.msra.mxu1 %v1965_v49  ;;  %1968 = vmatprep.subr.bf16.mxu0 %v1967_v50  ;;  %v584_v49 = vld [vmem:[#allocation6 + $0x100] sm:$0xff] }
  0xc7   : > { %1976 = vmatprep.subr.bf16.mxu1 %v1975_v55  ;;  %v596_v50 = vld [vmem:[#allocation6 + $0x160] sm:$0xff] }
  0xc8   : > { %949 = vmatmul.mubr.f32.vlgmr.msra.gmra.mrb[4].mxu0 %v2465_v54  ;;  %v2005_v55 = vpack.c.bf16 %v596_v50, %v584_v49 }
  0xc9   : > { %1020 = vmatmul.mubr.f32.vlgmr.msra.gmra.mrb[4].mxu1 %v2465_v54  ;;  %1970 = vmatpush1.bf16.msra.mxu0 %v1969_v61  ;;  %v583_v54 = vld [vmem:[#allocation6 + $0xf8] sm:$0xff]  ;;  %v1470_v61 = vsub.s32 2, %v1461_v58 }
  0xca   : > { %1978 = vmatpush1.bf16.msra.mxu1 %v1977_v62  ;;  %1972 = vmatprep.subr.bf16.mxu0 %v1971_v63  ;;  %v1995_v28 = vpack.c.bf16 %v595_v20, %v583_v54  ;;  %v1466_v62 = vsub.s32 1, %v1461_v58  ;;  %v1474_v63 = vsub.s32 3, %v1461_v58  ;;  %v1490_v54 = vsub.s32 7, %v1461_v58 }
  0xcb   : > { %1980 = vmatprep.subr.bf16.mxu1 %v1979_v3  ;;  %1094 = vmatprep.mubr.f32.mxu0 %v2197_v6  ;;  %v1471_v1 = vrot.slane %v1456_v60, %v1470_v61 }
  0xcc   : > { %1165 = vmatprep.mubr.f32.mxu1 %v2197_v6  ;;  %v1467_v2 = vrot.slane %v1456_v60, %v1466_v62  ;;  %v1491_v26 = vrot.slane %v1456_v60, %v1490_v54  ;;  %v1507_v38 = vrot.slane %v1457_v29, %v1474_v63 }
  0xcd   : > { %1974 = vmatpush1.bf16.msra.mxu0 %v1973_v10 }
  0xce   : > { %1982 = vmatpush1.bf16.msra.mxu1 %v1981_v11  ;;  %1984 = vmatprep.subr.bf16.mxu0 %v1983_v12  ;;  %v1482_v12 = vsub.s32 5, %v1461_v58  ;;  %v1598_v58 = vstv %s1597_s23 }
  0xcf   : > { %1992 = vmatprep.subr.bf16.mxu1 %v1991_v16  ;;  %vm1599_vm2 = vcmp.lt.s32.totalorder %v1590_v44, %v1598_v58 }
  0xd0   : > { %1756 = vmatmul.mubr.msk.f32.vlgmr.msra.gmra.mrb[0].mxu0 %vm1026_vm0, %v551_v21  ;;  %v1483_v20 = vrot.slane %v1456_v60, %v1482_v12 }
  0xd1   : > { %1757 = vmatmul.mubr.msk.f32.vlgmr.msra.gmra.mrb[0].mxu1 %vm1026_vm0, %v551_v21  ;;  %1986 = vmatpush1.bf16.msra.mxu0 %v1985_v22  ;;  %v1487_v22 = vrot.slane %v1456_v60, %v1486_v17 }
  0xd2   : > { %1994 = vmatpush1.bf16.msra.mxu1 %v1993_v23  ;;  %1988 = vmatprep.subr.bf16.mxu0 %v1987_v24 }
  0xd3   : > { %1996 = vmatprep.subr.bf16.mxu1 %v1995_v28  ;;  %1236 = vmatprep.mubr.f32.mxu0 %v2197_v6 }
  0xd4   : > { %1307 = vmatprep.mubr.f32.mxu1 %v2197_v6 }
  0xd5   : > { %1990 = vmatpush1.bf16.msra.mxu0 %v1989_v34  ;;  %v1495_v34 = vrot.slane %v1457_v29, %v1462_v59 }
  0xd6   : > { %1998 = vmatpush1.bf16.msra.mxu1 %v1997_v35  ;;  %2000 = vmatprep.subr.bf16.mxu0 %v1999_v36  ;;  %v1503_v35 = vrot.slane %v1457_v29, %v1470_v61  ;;  %v1499_v36 = vrot.slane %v1457_v29, %v1466_v62 }
  0xd7   : > { %2008 = vmatprep.subr.bf16.mxu1 %v2007_v40 }
  0xd8   : > { %1758 = vmatmul.mubr.msk.f32.vlgmr.msra.gmra.mrb[2].mxu0 %vm1026_vm0, %v551_v21 }
  0xd9   : > { %1759 = vmatmul.mubr.msk.f32.vlgmr.msra.gmra.mrb[2].mxu1 %vm1026_vm0, %v551_v21  ;;  %2002 = vmatpush1.bf16.msra.mxu0 %v2001_v46 }
  0xda   : > { %2010 = vmatpush1.bf16.msra.mxu1 %v2009_v47  ;;  %2004 = vmatprep.subr.bf16.mxu0 %v2003_v48 }
  0xdb   : > { %2012 = vmatprep.subr.bf16.mxu1 %v2011_v51  ;;  %1378 = vmatprep.mubr.f32.mxu0 %v2197_v6 }
  0xdc   : > { %1449 = vmatprep.mubr.f32.mxu1 %v2197_v6  ;;  %v1475_v6 = vrot.slane %v1456_v60, %v1474_v63 }
  0xdd   : > { %2006 = vmatpush1.bf16.msra.mxu0 %v2005_v55  ;;  %v1593_v55 = vstv %s2378_s24 }
  0xde   : > { %2014 = vmatpush1.bf16.msra.mxu1 %v2013_v56  ;;  %vm1594_vm1 = vcmp.ge.s32.totalorder %v1590_v44, %v1593_v55 }
  0xdf   : > { %vm2614_vm3 = vmand %vm1594_vm1, %vm1599_vm2 }
  0xe0   : > { %1760 = vmatmul.mubr.msk.f32.vlgmr.msra.gmra.mrb[4].mxu0 %vm1026_vm0, %v551_v21 }
  0xe1   : > { %1761 = vmatmul.mubr.msk.f32.vlgmr.msra.gmra.mrb[4].mxu1 %vm1026_vm0, %v551_v21 }
 0x1a3   : > { %v1096_v3 = vpop.f32.mrb[0].mxu0 }
 0x1a4   : > { %v1520_v4 = vadd.f32 %v1463_v0, %v1096_v3  ;;  %v1167_v5 = vpop.f32.mrb[0].mxu1  ;;  %v1098_v7 = vpop.f32.mrb[1].mxu0  ;;  %v1591_v0 = vadd.s32 128, %v1590_v44 }
 0x1a5   : > { %v1522_v9 = vadd.f32 %v1471_v1, %v1167_v5  ;;  %v1521_v10 = vadd.f32 %v1467_v2, %v1098_v7  ;;  %v1169_v11 = vpop.f32.mrb[1].mxu1  ;;  %v1592_v2 = vadd.s32 256, %v1590_v44 }
 0x1a6   : > { %v1762_v13 = vmul.f32 -1.442695, %v1520_v4  ;;  %v1523_v14 = vadd.f32 %v1475_v6, %v1169_v11  ;;  %v1605_v4 = vld [vmem:[#allocation3] sm:$0xff]  ;;  %vm1595_vm4 = vcmp.ge.s32.totalorder %v1591_v0, %v1593_v55  ;;  %vm1600_vm5 = vcmp.lt.s32.totalorder %v1591_v0, %v1598_v58 }
 0x1a7   : > { %v1764_v15 = vmul.f32 -1.442695, %v1522_v9  ;;  %v1763_v16 = vmul.f32 -1.442695, %v1521_v10  ;;  %v1608_v9 = vsel %vm2614_vm3, %v1605_v4, 0.0  ;;  %vm1596_vm6 = vcmp.ge.s32.totalorder %v1592_v2, %v1593_v55  ;;  %vm2620_vm8 = vmand %vm1595_vm4, %vm1600_vm5 }
 0x1a8   : > { %2060 = vpow2.f32 %v1762_v13  ;;  %v1765_v18 = vmul.f32 -1.442695, %v1523_v14  ;;  %vm1601_vm7 = vcmp.lt.s32.totalorder %v1592_v2, %v1598_v58  ;;  %v1606_v14 = vld [vmem:[#allocation3 + $0x8] sm:$0xff] }
 0x1a9   : > { %2062 = vpow2.f32 %v1764_v15  ;;  %vm2624_vm9 = vmand %vm1596_vm6, %vm1601_vm7 }
 0x1aa   : > { %2064 = vpow2.f32 %v1763_v16 }
 0x1ab   : > { %2066 = vpow2.f32 %v1765_v18  ;;  %v1238_v21 = vpop.f32.mrb[2].mxu0 }
 0x1ac   : > { %v1524_v23 = vadd.f32 %v1479_v19, %v1238_v21  ;;  %v1309_v24 = vpop.f32.mrb[2].mxu1  ;;  %v1240_v25 = vpop.f32.mrb[3].mxu0  ;;  %v1607_v19 = vld [vmem:[#allocation3 + $0x10] sm:$0xff] }
 0x1ad   : > { %v1525_v27 = vadd.f32 %v1483_v20, %v1240_v25  ;;  %v1311_v28 = vpop.f32.mrb[3].mxu1  ;;  %v1526_v31 = vadd.f32 %v1487_v22, %v1309_v24  ;;  %v1609_v22 = vsel %vm2620_vm8, %v1606_v14, 0.0  ;;  %v1610_v25 = vsel %vm2624_vm9, %v1607_v19, 0.0 }
 0x1ae   : > { %v1766_v30 = vmul.f32 -1.442695, %v1524_v23  ;;  %v1527_v33 = vadd.f32 %v1491_v26, %v1311_v28 }
 0x1af   : > { %v1767_v32 = vmul.f32 -1.442695, %v1525_v27 }
 0x1b0   : > { %2068 = vpow2.f32 %v1766_v30 }
 0x1b1   : > { %2070 = vpow2.f32 %v1767_v32 }
 0x1b2   : > { %v2061_v37 = vpop.eup %2060  ;;  %2072 = vtanh.f32 %v1526_v31 }
 0x1b3   : > { %v2063_v39 = vpop.eup %2062  ;;  %v1541_v40 = vadd.f32 1.0, %v2061_v37  ;;  %v1380_v41 = vpop.f32.mrb[4].mxu0  ;;  %2074 = vtanh.f32 %v1527_v33 }
 0x1b4   : > { %v2065_v42 = vpop.eup %2064  ;;  %v1543_v43 = vadd.f32 1.0, %v2063_v39  ;;  %v1528_v45 = vadd.f32 %v1495_v34, %v1380_v41  ;;  %v1451_v46 = vpop.f32.mrb[4].mxu1 }
 0x1b5   : > { %v1382_v47 = vpop.f32.mrb[5].mxu0  ;;  %v2067_v48 = vpop.eup %2066  ;;  %2076 = vrcp.f32 %v1541_v40  ;;  %v1542_v49 = vadd.f32 1.0, %v2065_v42  ;;  %v1530_v50 = vadd.f32 %v1503_v35, %v1451_v46 }
 0x1b6   : > { %v1529_v51 = vadd.f32 %v1499_v36, %v1382_v47  ;;  %v1453_v52 = vpop.f32.mrb[5].mxu1  ;;  %2078 = vrcp.f32 %v1543_v43  ;;  %v1559_v53 = vadd.f32 1.0, %v2067_v48 }
 0x1b7   : > { %v1531_v56 = vadd.f32 %v1507_v38, %v1453_v52  ;;  %2080 = vrcp.f32 %v1542_v49  ;;  %v1769_v59 = vmul.f32 -1.442695, %v1530_v50 }
 0x1b8   : > { %v1768_v60 = vmul.f32 -1.442695, %v1529_v51  ;;  %2082 = vrcp.f32 %v1559_v53 }
 0x1b9   : > { %v1770_v57 = vmul.f32 -1.442695, %v1531_v56  ;;  %2084 = vtanh.f32 %v1528_v45 }
 0x1ba   : > { %v2069_v61 = vpop.eup %2068  ;;  %2086 = vpow2.f32 %v1769_v59 }
 0x1bb   : > { %v2071_v62 = vpop.eup %2070  ;;  %v1560_v63 = vadd.f32 1.0, %v2069_v61  ;;  %2088 = vpow2.f32 %v1768_v60 }
 0x1bc   : > { %v1561_v1 = vadd.f32 1.0, %v2071_v62  ;;  %2090 = vpow2.f32 %v1770_v57  ;;  %v2073_v6 = vpop.eup %2072 }
 0x1bd   : > { %2092 = vrcp.f32 %v1560_v63  ;;  %v2075_v5 = vpop.eup %2074 }
 0x1be   : > { %2094 = vrcp.f32 %v1561_v1 }
 0x1bf   : > { %v2077_v7 = vpop.eup %2076 }
 0x1c0   : > { %v2079_v8 = vpop.eup %2078  ;;  %v1614_v10 = vmul.f32 %v2077_v7, %v2073_v6 }
 0x1c1   : > { %v2081_v11 = vpop.eup %2080 }
 0x1c2   : > { %v2083_v12 = vpop.eup %2082  ;;  %v1615_v15 = vmul.f32 %v2081_v11, %v2075_v5 }
 0x1c3   : > { %v2085_v16 = vpop.eup %2084  ;;  %v1611_v17 = vmul.f32 %v2083_v12, %v1608_v9 }
 0x1c4   : > { %v2087_v54 = vpop.eup %2086  ;;  %v1616_v20 = vmul.f32 %v2085_v16, %v2079_v8 }
 0x1c5   : > { %v2089_v21 = vpop.eup %2088  ;;  %v1617_v23 = vadd.f32 %v1614_v10, %v1611_v17  ;;  %v1581_v26 = vadd.f32 1.0, %v2087_v54 }
 0x1c6   : > { %v2091_v24 = vpop.eup %2090  ;;  %v1580_v27 = vadd.f32 1.0, %v2089_v21 }
 0x1c7   : > { %v2093_v28 = vpop.eup %2092  ;;  %2096 = vtanh.f32 %v1617_v23  ;;  %1626 = vst [vmem:[#allocation3] sm:$0xff] %v1617_v23  ;;  %v1582_v29 = vadd.f32 1.0, %v2091_v24 }
 0x1c8   : > { %v2095_v30 = vpop.eup %2094  ;;  %v1612_v31 = vmul.f32 %v2093_v28, %v1609_v22  ;;  %2098 = vrcp.f32 %v1580_v27 }
 0x1c9   : > { %v1613_v32 = vmul.f32 %v2095_v30, %v1610_v25  ;;  %2100 = vrcp.f32 %v1581_v26 }
 0x1ca   : > { %v1618_v33 = vadd.f32 %v1615_v15, %v1612_v31  ;;  %2102 = vrcp.f32 %v1582_v29 }
 0x1cb   : > { %v1619_v34 = vadd.f32 %v1616_v20, %v1613_v32 }
 0x1cc   : > { %2104 = vtanh.f32 %v1618_v33  ;;  %1627 = vst [vmem:[#allocation3 + $0x8] sm:$0xff] %v1618_v33 }
 0x1cd   : > { %2106 = vtanh.f32 %v1619_v34  ;;  %1628 = vst [vmem:[#allocation3 + $0x10] sm:$0xff] %v1619_v34 }
 0x1ce   : > { %v1644_v48 = vld [vmem:[#allocation3] sm:$0xff] (!%p1771_p13) }
 0x1cf   : > { %1647 = vst [vmem:[%s2666_s9] sm:$0xff] (!%p1771_p13), %v1644_v48 }
 0x1d1   : > { %v2097_v35 = vpop.eup %2096 }
 0x1d2   : > { %v2099_v36 = vpop.eup %2098 }
 0x1d3   : > { %v2101_v37 = vpop.eup %2100  ;;  %v1623_v38 = vmul.f32 %v2099_v36, %v2097_v35  ;;  %v1645_v49 = vld [vmem:[#allocation3 + $0x8] sm:$0xff] (!%p1771_p13) }
 0x1d4   : > { %v2103_v39 = vpop.eup %2102  ;;  %v1646_v50 = vld [vmem:[#allocation3 + $0x10] sm:$0xff] (!%p1771_p13)  ;;  %1648 = vst [vmem:[%s2666_s9 + $0x8] sm:$0xff] (!%p1771_p13), %v1645_v49 }
 0x1d5   : > { %1629 = vst [vmem:[#allocation2] sm:$0xff] %v1623_v38  ;;  %1649 = vst [vmem:[%s2666_s9 + $0x10] sm:$0xff] (!%p1771_p13), %v1646_v50 }
 0x1d6   : > { %v2105_v40 = vpop.eup %2104 }
 0x1d7   : > { %v2107_v41 = vpop.eup %2106  ;;  %v1624_v42 = vmul.f32 %v2105_v40, %v2101_v37 }
 0x1d8   : > { %v1625_v43 = vmul.f32 %v2107_v41, %v2103_v39 }
 0x1d9   : > { %1630 = vst [vmem:[#allocation2 + $0x8] sm:$0xff] %v1624_v42 }
 0x1da   : > { %1631 = vst [vmem:[#allocation2 + $0x10] sm:$0xff] %v1625_v43 }
 0x1dc   : > { %1637 = sbr.rel (%p1771_p13) target bundleno = 483 (0x1e3), region = 60  ;;  %v1638_v45 = vld [vmem:[#allocation2] sm:$0xff] (!%p1771_p13) }
 0x1dd   : > { %1641 = vst [vmem:[%s2665_s8] sm:$0xff] (!%p1771_p13), %v1638_v45 }
 0x1e0   : > { %v1639_v46 = vld [vmem:[#allocation2 + $0x8] sm:$0xff] (!%p1771_p13) }
 0x1e1   : > { %v1632_v44 = vld [vmem:[%s352_s16] sm:$0xff]  ;;  %v1640_v47 = vld [vmem:[#allocation2 + $0x10] sm:$0xff] (!%p1771_p13)  ;;  %1642 = vst [vmem:[%s2665_s8 + $0x8] sm:$0xff] (!%p1771_p13), %v1639_v46 }
 0x1e2   : > { %1633 = vst [vmem:[%s2353_s14] sm:$0xff] %v1632_v44  ;;  %1643 = vst [vmem:[%s2665_s8 + $0x10] sm:$0xff] (!%p1771_p13), %v1640_v47 }
 0x1e3 PF: > { %s26_s19 = sadd.s32 1, %s2190_s19  }
 0x1e4   : > { %p23_p0 = scmp.ge.s32.totalorder %s26_s19, 9  }
 0x1e6   :  { %25 = sbr.rel (!%p23_p0) target bundleno = 14 (0xe), region = 109 }
 0x1ed   :  { %1681 = vsyncpa [#allocation7], 1 }
 0x1ee   :  { %1683 = vsyncpa [#allocation7 + $0x1], 1 }
 0x1ef   :  { %1684 = vsyncpa [#allocation9], 1 }

</bundles_post_ra>
